<compile_context>
chip_gen: v5e
topology: v5e:2x2
jax: 0.10.0
libtpu: 0.0.40
codegen_flags: <defaults>
</compile_context>

<pallas_src>
import functools

import jax
import jax.numpy as jnp
import numpy as np
from jax.experimental import pallas as pl
from jax.experimental.pallas import tpu as pltpu


def _smoothness_kernel(tri_ref, q_ref, c_ref, out_ref, cnt_ref, acc_ref, fst_ref,
                       *, radius2, nsample, n_pos):
    """Grid = (batch, i-tile, j-chunk); per-query stats carried over j in (1, TI) scratch."""
    jc = pl.program_id(2)
    njc = pl.num_programs(2)

    @pl.when(jc == 0)
    def _():
        cnt_ref[...] = jnp.zeros_like(cnt_ref)
        acc_ref[...] = jnp.zeros_like(acc_ref)
        fst_ref[...] = jnp.zeros_like(fst_ref)

    q = q_ref[0]          # (3+C, TI)  query features,     lane-dense
    cand = c_ref[0]       # (TJ, 3+C)  candidate features, sublane-dense
    tj = cand.shape[0]
    ti = q.shape[1]
    n_flow = q.shape[0] - n_pos

    # --- pairwise squared distance, direct per-channel form (boundary-exact `within`) ---
    dist2 = jnp.zeros((tj, ti), jnp.float32)
    for c in range(n_pos):
        d = cand[:, c:c + 1] - q[c:c + 1, :]
        dist2 = dist2 + d * d
    within = dist2 < radius2                       # bool (TJ, TI)
    within_bf = within.astype(jnp.bfloat16)        # exact 0/1, MXU operand

    # --- ball-query rank: carried count + chunk-local exclusive prefix (bf16 MXU matmul) ---
    prefix = jnp.dot(tri_ref[...], within_bf, preferred_element_type=jnp.float32)
    rank = cnt_ref[...] + prefix                   # (1,TI) + (TJ,TI): global scan-order rank

    # --- flow-difference L2 norm, direct per-channel form (no Gram cancellation / clamp) ---
    fsq = jnp.zeros((tj, ti), jnp.float32)
    for c in range(n_flow):
        d = cand[:, n_pos + c:n_pos + c + 1] - q[n_pos + c:n_pos + c + 1, :]
        fsq = fsq + d * d
    nrm = jnp.sqrt(fsq)

    # --- fused masked reductions over the candidate (sublane) axis ---
    sel_nrm = jnp.where(within & (rank < float(nsample)), nrm, 0.0)
    fst_nrm = jnp.where(within & (rank == 0.0), nrm, 0.0)
    acc_ref[...] += jnp.sum(sel_nrm, axis=0, keepdims=True)
    fst_ref[...] += jnp.sum(fst_nrm, axis=0, keepdims=True)
    # chunk within-count from the prefix matmul's last row (saves a third XLU reduction)
    cnt_ref[...] += prefix[tj - 1:tj, :] + within_bf[tj - 1:tj, :].astype(jnp.float32)

    @pl.when(jc == njc - 1)
    def _():
        count = cnt_ref[...]                                           # total in-radius count
        fill = float(nsample) - jnp.minimum(count, float(nsample))     # repeated 1st-slot count
        per_query = acc_ref[...] + fill * fst_ref[...]                 # (1, TI)
        out_ref[...] = jnp.zeros(out_ref.shape, out_ref.dtype) + jnp.sum(per_query)


def _vmem_capacity_bytes():
    """Generation-aware physical VMEM size (v7x: 64 MiB, v5e/v6e: 128 MiB)."""
    try:
        cap = getattr(pltpu.get_tpu_info(), "vmem_capacity_bytes", None)
        if cap:
            return int(cap)
    except Exception:
        pass
    return 64 * 1024 * 1024   # conservative default (v7x per-TensorCore)


def _choose_tiles(n, vmem_cap):
    """(TI, TJ, vmem_limit): multiples of 128 dividing n, budgeted against live (TJ,TI) slabs."""
    limit = max(16 * 1024 * 1024, min((vmem_cap * 3) // 4, 96 * 1024 * 1024))

    def pick(cap):
        best = None
        for d in range(128, n + 1, 128):
            if n % d == 0 and d <= cap:
                best = d
        return best if best is not None else n      # tiny / odd n: single full-width tile

    tj = pick(256)                                   # candidate chunk: MXU-aligned, v5e friendly
    slab_budget = limit // 2                         # ~10 live (TJ, TI) f32 slabs per step
    ti_cap = max(128, min(1024, (slab_budget // (10 * tj * 4)) // 128 * 128))
    ti = pick(ti_cap)
    return ti, tj, int(limit)


def smoothness_loss(flow, pc1, radius, nsample, ti=None, tj=None):
    """flow: (B, C, N), pc1: (B, 3, N)  ->  scalar loss (matches SmoothnessLoss.forward)."""
    B, C, N = flow.shape
    n_pos = pc1.shape[1]
    auto_ti, auto_tj, vmem_limit = _choose_tiles(N, _vmem_capacity_bytes())
    ti = auto_ti if ti is None else ti
    tj = auto_tj if tj is None else tj
    assert N % ti == 0 and N % tj == 0, (N, ti, tj)
    ni, nj = N // ti, N // tj
    nfeat = n_pos + C

    # One fused feature array: channel-first (lane-dense) for the resident query side plus one
    # transposed copy for the per-chunk candidate side -> one DMA per side instead of two.
    feat = jnp.concatenate([pc1, flow], axis=1)      # (B, 3+C, N)
    feat_t = jnp.transpose(feat, (0, 2, 1))          # (B, N, 3+C)

    # Strict lower-triangular "k < j" matrix for the exclusive-prefix rank matmul.  bf16 is
    # exact for 0/1 counting; resident in VMEM via a constant block index.
    row = jax.lax.broadcasted_iota(jnp.int32, (tj, tj), 0)
    col = jax.lax.broadcasted_iota(jnp.int32, (tj, tj), 1)
    tri = (col < row).astype(jnp.bfloat16)

    out = pl.pallas_call(
        functools.partial(_smoothness_kernel,
                          radius2=float(radius) * float(radius),
                          nsample=int(nsample), n_pos=int(n_pos)),
        out_shape=jax.ShapeDtypeStruct((B, ni, 8, 128), jnp.float32),
        grid_spec=pltpu.PrefetchScalarGridSpec(
            num_scalar_prefetch=0,
            grid=(B, ni, nj),
            in_specs=[
                pl.BlockSpec((tj, tj), lambda b, i, j: (0, 0)),           # tri (resident)
                pl.BlockSpec((1, nfeat, ti), lambda b, i, j: (b, 0, i)),  # query tile (per b,i)
                pl.BlockSpec((1, tj, nfeat), lambda b, i, j: (b, j, 0)),  # candidate chunk (per j)
            ],
            out_specs=pl.BlockSpec((1, 1, 8, 128), lambda b, i, j: (b, i, 0, 0)),
            scratch_shapes=[
                pltpu.VMEM((1, ti), jnp.float32),   # carried in-radius count (exclusive rank)
                pltpu.VMEM((1, ti), jnp.float32),   # accumulated selected-neighbor norms
                pltpu.VMEM((1, ti), jnp.float32),   # first-neighbor norm
            ],
        ),
        compiler_params=pltpu.CompilerParams(
            dimension_semantics=("parallel", "parallel", "arbitrary"),
            vmem_limit_bytes=vmem_limit,
        ),
    )(tri, feat, feat_t)

    return jnp.sum(out[:, :, 0, 0]) / (B * nsample)


def ref_loss(flow, pc1, radius, nsample):
    """Pure-JAX reference with an explicit ball_query index gather (pointnet2 semantics)."""
    B, C, N = flow.shape
    diff = pc1[:, :, :, None] - pc1[:, :, None, :]
    dist2 = jnp.sum(diff * diff, axis=1)                       # (B, N, N)
    within = dist2 < radius * radius
    jj = jnp.arange(N)
    sort_key = jnp.where(within, jj[None, None, :], N + jj[None, None, :])
    order = jnp.argsort(sort_key, axis=-1)                     # within-radius indices first
    cand = order[..., :nsample]                                # (B, N, nsample)
    count = jnp.sum(within, axis=-1)                           # (B, N)
    first = order[..., 0:1]                                    # (B, N, 1)
    s_idx = jnp.arange(nsample)[None, None, :]
    idx = jnp.where(s_idx < count[..., None], cand, first)     # (B, N, nsample)

    flow_b = jnp.broadcast_to(flow[:, :, None, :], (B, C, N, N))
    idx_b = jnp.broadcast_to(idx[:, None, :, :], (B, C, N, nsample))
    grouped = jnp.take_along_axis(flow_b, idx_b, axis=-1)      # (B, C, N, nsample)
    fd = grouped - flow[:, :, :, None]
    nrm = jnp.sqrt(jnp.sum(fd * fd, axis=1))                   # (B, N, nsample)
    return jnp.mean(jnp.sum(nrm, axis=1))


if __name__ == "__main__":
    key = jax.random.PRNGKey(0)
    radius, nsample = 0.5, 8
    k1, k2, k3, k4 = jax.random.split(key, 4)

    # Case 1: single tile (N == TI == TJ).
    B, C, N = 2, 3, 128
    pc1 = jax.random.uniform(k1, (B, 3, N), dtype=jnp.float32)            # points in [0,1)^3
    flow = 0.1 * jax.random.normal(k2, (B, C, N), dtype=jnp.float32)
    loss = jax.block_until_ready(smoothness_loss(flow, pc1, radius, nsample))
    ref = jax.block_until_ready(ref_loss(flow, pc1, radius, nsample))
    np.testing.assert_allclose(np.asarray(loss), np.asarray(ref), rtol=1e-3, atol=1e-3)

    # Case 2: multiple i-tiles AND j-chunks (exercises the carried rank and per-tile outputs).
    B2, C2, N2 = 2, 3, 256
    pc1b = jax.random.uniform(k3, (B2, 3, N2), dtype=jnp.float32)
    flowb = 0.1 * jax.random.normal(k4, (B2, C2, N2), dtype=jnp.float32)
    loss2 = jax.block_until_ready(
        smoothness_loss(flowb, pc1b, radius, nsample, ti=128, tj=128))
    ref2 = jax.block_until_ready(ref_loss(flowb, pc1b, radius, nsample))
    np.testing.assert_allclose(np.asarray(loss2), np.asarray(ref2), rtol=1e-3, atol=1e-3)

    print("KERNEL_OK")
</pallas_src>

<mosaic_0001>
module attributes {stable_mosaic.version = 11 : i64} {
  func.func @_smoothness_kernel(%arg0: i32, %arg1: i32, %arg2: i32, %arg3: memref<128x128xbf16, #tpu.memory_space<vmem>>, %arg4: memref<1x6x128xf32, #tpu.memory_space<vmem>>, %arg5: memref<1x128x6xf32, #tpu.memory_space<vmem>>, %arg6: memref<1x1x8x128xf32, #tpu.memory_space<vmem>>, %arg7: memref<1x128xf32, #tpu.memory_space<vmem>>, %arg8: memref<1x128xf32, #tpu.memory_space<vmem>>, %arg9: memref<1x128xf32, #tpu.memory_space<vmem>>) attributes {dimension_semantics = [#tpu.dimension_semantics<parallel>, #tpu.dimension_semantics<parallel>, #tpu.dimension_semantics<arbitrary>], iteration_bounds = array<i64: 2, 1, 1>, scalar_prefetch = 0 : i64, scratch_operands = 3 : i64, tpu.core_type = #tpu.core_type<tc>, window_params = [{pipeline_mode = #tpu.pipeline_mode<synchronous>, transform_indices = @transform_0, window_bounds = array<i64: 128, 128>}, {transform_indices = @transform_1, window_bounds = array<i64: 1, 6, 128>}, {transform_indices = @transform_2, window_bounds = array<i64: 1, 128, 6>}, {transform_indices = @transform_3, window_bounds = array<i64: 1, 1, 8, 128>}]} {
    %c0_i32 = arith.constant 0 : i32
    %0 = arith.cmpi eq, %arg2, %c0_i32 : i32
    %1 = arith.extui %0 : i1 to i32
    %c0_i32_0 = arith.constant 0 : i32
    %2 = arith.cmpi ne, %1, %c0_i32_0 : i32
    scf.if %2 {
      %cst_33 = arith.constant 0.000000e+00 : f32
      %92 = vector.broadcast %cst_33 : f32 to vector<1x128xf32>
      %c0_34 = arith.constant 0 : index
      %c0_35 = arith.constant 0 : index
      %93 = vector.load %arg7[%c0_34, %c0_35] : memref<1x128xf32, #tpu.memory_space<vmem>>, vector<1x128xf32>
      tpu.vector_store %arg7[%c0_34, %c0_35], %92 {strides = array<i32>} : memref<1x128xf32, #tpu.memory_space<vmem>>, vector<1x128xf32>,
      %cst_36 = arith.constant 0.000000e+00 : f32
      %94 = vector.broadcast %cst_36 : f32 to vector<1x128xf32>
      %c0_37 = arith.constant 0 : index
      %c0_38 = arith.constant 0 : index
      %95 = vector.load %arg8[%c0_37, %c0_38] : memref<1x128xf32, #tpu.memory_space<vmem>>, vector<1x128xf32>
      tpu.vector_store %arg8[%c0_37, %c0_38], %94 {strides = array<i32>} : memref<1x128xf32, #tpu.memory_space<vmem>>, vector<1x128xf32>,
      %cst_39 = arith.constant 0.000000e+00 : f32
      %96 = vector.broadcast %cst_39 : f32 to vector<1x128xf32>
      %c0_40 = arith.constant 0 : index
      %c0_41 = arith.constant 0 : index
      %97 = vector.load %arg9[%c0_40, %c0_41] : memref<1x128xf32, #tpu.memory_space<vmem>>, vector<1x128xf32>
      tpu.vector_store %arg9[%c0_40, %c0_41], %96 {strides = array<i32>} : memref<1x128xf32, #tpu.memory_space<vmem>>, vector<1x128xf32>,
    } else {
    }
    %c0 = arith.constant 0 : index
    %c0_1 = arith.constant 0 : index
    %c0_2 = arith.constant 0 : index
    %3 = vector.load %arg4[%c0, %c0_1, %c0_2] : memref<1x6x128xf32, #tpu.memory_space<vmem>>, vector<1x6x128xf32>
    %4 = vector.shape_cast %3 : vector<1x6x128xf32> to vector<6x128xf32>
    %c0_3 = arith.constant 0 : index
    %c0_4 = arith.constant 0 : index
    %c0_5 = arith.constant 0 : index
    %5 = vector.load %arg5[%c0_3, %c0_4, %c0_5] : memref<1x128x6xf32, #tpu.memory_space<vmem>>, vector<1x128x6xf32>
    %6 = vector.shape_cast %5 : vector<1x128x6xf32> to vector<128x6xf32>
    %cst = arith.constant 0.000000e+00 : f32
    %7 = vector.broadcast %cst : f32 to vector<128x128xf32>
    %8 = vector.extract_strided_slice %6 {offsets = [0, 0], sizes = [128, 1], strides = [1, 1]} : vector<128x6xf32> to vector<128x1xf32>
    %9 = vector.extract_strided_slice %4 {offsets = [0, 0], sizes = [1, 128], strides = [1, 1]} : vector<6x128xf32> to vector<1x128xf32>
    %10 = vector.broadcast %8 : vector<128x1xf32> to vector<128x128xf32>
    %11 = vector.broadcast %9 : vector<1x128xf32> to vector<128x128xf32>
    %12 = arith.subf %10, %11 : vector<128x128xf32>
    %13 = arith.mulf %12, %12 : vector<128x128xf32>
    %14 = arith.addf %7, %13 : vector<128x128xf32>
    %15 = vector.extract_strided_slice %6 {offsets = [0, 1], sizes = [128, 1], strides = [1, 1]} : vector<128x6xf32> to vector<128x1xf32>
    %16 = vector.extract_strided_slice %4 {offsets = [1, 0], sizes = [1, 128], strides = [1, 1]} : vector<6x128xf32> to vector<1x128xf32>
    %17 = vector.broadcast %15 : vector<128x1xf32> to vector<128x128xf32>
    %18 = vector.broadcast %16 : vector<1x128xf32> to vector<128x128xf32>
    %19 = arith.subf %17, %18 : vector<128x128xf32>
    %20 = arith.mulf %19, %19 : vector<128x128xf32>
    %21 = arith.addf %14, %20 : vector<128x128xf32>
    %22 = vector.extract_strided_slice %6 {offsets = [0, 2], sizes = [128, 1], strides = [1, 1]} : vector<128x6xf32> to vector<128x1xf32>
    %23 = vector.extract_strided_slice %4 {offsets = [2, 0], sizes = [1, 128], strides = [1, 1]} : vector<6x128xf32> to vector<1x128xf32>
    %24 = vector.broadcast %22 : vector<128x1xf32> to vector<128x128xf32>
    %25 = vector.broadcast %23 : vector<1x128xf32> to vector<128x128xf32>
    %26 = arith.subf %24, %25 : vector<128x128xf32>
    %27 = arith.mulf %26, %26 : vector<128x128xf32>
    %28 = arith.addf %21, %27 : vector<128x128xf32>
    %cst_6 = arith.constant 2.500000e-01 : f32
    %29 = vector.broadcast %cst_6 : f32 to vector<128x128xf32>
    %30 = arith.cmpf olt, %28, %29 : vector<128x128xf32>
    %31 = arith.extui %30 : vector<128x128xi1> to vector<128x128xi32>
    %32 = arith.sitofp %31 : vector<128x128xi32> to vector<128x128xf32>
    %33 = arith.truncf %32 : vector<128x128xf32> to vector<128x128xbf16>
    %c0_7 = arith.constant 0 : index
    %c0_8 = arith.constant 0 : index
    %34 = vector.load %arg3[%c0_7, %c0_8] : memref<128x128xbf16, #tpu.memory_space<vmem>>, vector<128x128xbf16>
    %cst_9 = arith.constant dense<0.000000e+00> : vector<128x128xf32>
    %35 = tpu.matmul %34, %33, %cst_9 {dimension_numbers = #tpu.dot_dimension_numbers<[1], [0], [0], [1], [0, 0, 1, 1], [], []>} : vector<128x128xbf16>, vector<128x128xbf16>, vector<128x128xf32> -> vector<128x128xf32>
    %c0_10 = arith.constant 0 : index
    %c0_11 = arith.constant 0 : index
    %36 = vector.load %arg7[%c0_10, %c0_11] : memref<1x128xf32, #tpu.memory_space<vmem>>, vector<1x128xf32>
    %37 = vector.broadcast %36 : vector<1x128xf32> to vector<128x128xf32>
    %38 = arith.addf %37, %35 : vector<128x128xf32>
    %cst_12 = arith.constant 0.000000e+00 : f32
    %39 = vector.broadcast %cst_12 : f32 to vector<128x128xf32>
    %40 = vector.extract_strided_slice %6 {offsets = [0, 3], sizes = [128, 1], strides = [1, 1]} : vector<128x6xf32> to vector<128x1xf32>
    %41 = vector.extract_strided_slice %4 {offsets = [3, 0], sizes = [1, 128], strides = [1, 1]} : vector<6x128xf32> to vector<1x128xf32>
    %42 = vector.broadcast %40 : vector<128x1xf32> to vector<128x128xf32>
    %43 = vector.broadcast %41 : vector<1x128xf32> to vector<128x128xf32>
    %44 = arith.subf %42, %43 : vector<128x128xf32>
    %45 = arith.mulf %44, %44 : vector<128x128xf32>
    %46 = arith.addf %39, %45 : vector<128x128xf32>
    %47 = vector.extract_strided_slice %6 {offsets = [0, 4], sizes = [128, 1], strides = [1, 1]} : vector<128x6xf32> to vector<128x1xf32>
    %48 = vector.extract_strided_slice %4 {offsets = [4, 0], sizes = [1, 128], strides = [1, 1]} : vector<6x128xf32> to vector<1x128xf32>
    %49 = vector.broadcast %47 : vector<128x1xf32> to vector<128x128xf32>
    %50 = vector.broadcast %48 : vector<1x128xf32> to vector<128x128xf32>
    %51 = arith.subf %49, %50 : vector<128x128xf32>
    %52 = arith.mulf %51, %51 : vector<128x128xf32>
    %53 = arith.addf %46, %52 : vector<128x128xf32>
    %54 = vector.extract_strided_slice %6 {offsets = [0, 5], sizes = [128, 1], strides = [1, 1]} : vector<128x6xf32> to vector<128x1xf32>
    %55 = vector.extract_strided_slice %4 {offsets = [5, 0], sizes = [1, 128], strides = [1, 1]} : vector<6x128xf32> to vector<1x128xf32>
    %56 = vector.broadcast %54 : vector<128x1xf32> to vector<128x128xf32>
    %57 = vector.broadcast %55 : vector<1x128xf32> to vector<128x128xf32>
    %58 = arith.subf %56, %57 : vector<128x128xf32>
    %59 = arith.mulf %58, %58 : vector<128x128xf32>
    %60 = arith.addf %53, %59 : vector<128x128xf32>
    %61 = math.sqrt %60 : vector<128x128xf32>
    %cst_13 = arith.constant 8.000000e+00 : f32
    %62 = vector.broadcast %cst_13 : f32 to vector<128x128xf32>
    %63 = arith.cmpf olt, %38, %62 : vector<128x128xf32>
    %64 = arith.andi %30, %63 : vector<128x128xi1>
    %cst_14 = arith.constant 0.000000e+00 : f32
    %65 = vector.broadcast %cst_14 : f32 to vector<128x128xf32>
    %66 = arith.select %64, %61, %65 : vector<128x128xi1>, vector<128x128xf32>
    %cst_15 = arith.constant 0.000000e+00 : f32
    %67 = vector.broadcast %cst_15 : f32 to vector<128x128xf32>
    %68 = arith.cmpf oeq, %38, %67 : vector<128x128xf32>
    %69 = arith.andi %30, %68 : vector<128x128xi1>
    %cst_16 = arith.constant 0.000000e+00 : f32
    %70 = vector.broadcast %cst_16 : f32 to vector<128x128xf32>
    %71 = arith.select %69, %61, %70 : vector<128x128xi1>, vector<128x128xf32>
    %c0_17 = arith.constant 0 : index
    %c0_18 = arith.constant 0 : index
    %72 = vector.load %arg8[%c0_17, %c0_18] : memref<1x128xf32, #tpu.memory_space<vmem>>, vector<1x128xf32>
    %cst_19 = arith.constant dense<0.000000e+00> : vector<128xf32>
    %73 = vector.multi_reduction <add>, %66, %cst_19 [0] : vector<128x128xf32> to vector<128xf32>
    %74 = vector.shape_cast %73 : vector<128xf32> to vector<1x128xf32>
    %75 = arith.addf %72, %74 : vector<1x128xf32>
    %c0_20 = arith.constant 0 : index
    %c0_21 = arith.constant 0 : index
    %76 = vector.load %arg8[%c0_20, %c0_21] : memref<1x128xf32, #tpu.memory_space<vmem>>, vector<1x128xf32>
    tpu.vector_store %arg8[%c0_20, %c0_21], %75 {strides = array<i32>} : memref<1x128xf32, #tpu.memory_space<vmem>>, vector<1x128xf32>,
    %c0_22 = arith.constant 0 : index
    %c0_23 = arith.constant 0 : index
    %77 = vector.load %arg9[%c0_22, %c0_23] : memref<1x128xf32, #tpu.memory_space<vmem>>, vector<1x128xf32>
    %cst_24 = arith.constant dense<0.000000e+00> : vector<128xf32>
    %78 = vector.multi_reduction <add>, %71, %cst_24 [0] : vector<128x128xf32> to vector<128xf32>
    %79 = vector.shape_cast %78 : vector<128xf32> to vector<1x128xf32>
    %80 = arith.addf %77, %79 : vector<1x128xf32>
    %c0_25 = arith.constant 0 : index
    %c0_26 = arith.constant 0 : index
    %81 = vector.load %arg9[%c0_25, %c0_26] : memref<1x128xf32, #tpu.memory_space<vmem>>, vector<1x128xf32>
    tpu.vector_store %arg9[%c0_25, %c0_26], %80 {strides = array<i32>} : memref<1x128xf32, #tpu.memory_space<vmem>>, vector<1x128xf32>,
    %c0_27 = arith.constant 0 : index
    %c0_28 = arith.constant 0 : index
    %82 = vector.load %arg7[%c0_27, %c0_28] : memref<1x128xf32, #tpu.memory_space<vmem>>, vector<1x128xf32>
    %83 = vector.extract_strided_slice %35 {offsets = [127, 0], sizes = [1, 128], strides = [1, 1]} : vector<128x128xf32> to vector<1x128xf32>
    %84 = vector.extract_strided_slice %33 {offsets = [127, 0], sizes = [1, 128], strides = [1, 1]} : vector<128x128xbf16> to vector<1x128xbf16>
    %85 = arith.extf %84 : vector<1x128xbf16> to vector<1x128xf32>
    %86 = arith.addf %83, %85 : vector<1x128xf32>
    %87 = arith.addf %82, %86 : vector<1x128xf32>
    %c0_29 = arith.constant 0 : index
    %c0_30 = arith.constant 0 : index
    %88 = vector.load %arg7[%c0_29, %c0_30] : memref<1x128xf32, #tpu.memory_space<vmem>>, vector<1x128xf32>
    tpu.vector_store %arg7[%c0_29, %c0_30], %87 {strides = array<i32>} : memref<1x128xf32, #tpu.memory_space<vmem>>, vector<1x128xf32>,
    %c0_i32_31 = arith.constant 0 : i32
    %89 = arith.cmpi eq, %arg2, %c0_i32_31 : i32
    %90 = arith.extui %89 : i1 to i32
    %c0_i32_32 = arith.constant 0 : i32
    %91 = arith.cmpi ne, %90, %c0_i32_32 : i32
    scf.if %91 {
      %c0_33 = arith.constant 0 : index
      %c0_34 = arith.constant 0 : index
      %92 = vector.load %arg7[%c0_33, %c0_34] : memref<1x128xf32, #tpu.memory_space<vmem>>, vector<1x128xf32>
      %cst_35 = arith.constant 8.000000e+00 : f32
      %93 = vector.broadcast %cst_35 : f32 to vector<1x128xf32>
      %94 = arith.minimumf %92, %93 : vector<1x128xf32>
      %cst_36 = arith.constant 8.000000e+00 : f32
      %95 = vector.broadcast %cst_36 : f32 to vector<1x128xf32>
      %96 = arith.subf %95, %94 : vector<1x128xf32>
      %c0_37 = arith.constant 0 : index
      %c0_38 = arith.constant 0 : index
      %97 = vector.load %arg8[%c0_37, %c0_38] : memref<1x128xf32, #tpu.memory_space<vmem>>, vector<1x128xf32>
      %c0_39 = arith.constant 0 : index
      %c0_40 = arith.constant 0 : index
      %98 = vector.load %arg9[%c0_39, %c0_40] : memref<1x128xf32, #tpu.memory_space<vmem>>, vector<1x128xf32>
      %99 = arith.mulf %96, %98 : vector<1x128xf32>
      %100 = arith.addf %97, %99 : vector<1x128xf32>
      %cst_41 = arith.constant 0.000000e+00 : f32
      %101 = vector.broadcast %cst_41 : f32 to vector<1x1x8x128xf32>
      %102 = vector.shape_cast %100 : vector<1x128xf32> to vector<1x1x128xf32>
      %cst_42 = arith.constant dense<0.000000e+00> : vector<1xf32>
      %103 = vector.multi_reduction <add>, %102, %cst_42 [1, 2] : vector<1x1x128xf32> to vector<1xf32>
      %104 = vector.shape_cast %103 : vector<1xf32> to vector<1x1x1xf32>
      %105 = vector.extract %104[0, 0, 0] : f32 from vector<1x1x1xf32>
      %106 = vector.broadcast %105 : f32 to vector<1x1x8x128xf32>
      %107 = arith.addf %101, %106 : vector<1x1x8x128xf32>
      %c0_43 = arith.constant 0 : index
      %c0_44 = arith.constant 0 : index
      %c0_45 = arith.constant 0 : index
      %c0_46 = arith.constant 0 : index
      %108 = vector.load %arg6[%c0_43, %c0_44, %c0_45, %c0_46] : memref<1x1x8x128xf32, #tpu.memory_space<vmem>>, vector<1x1x8x128xf32>
      tpu.vector_store %arg6[%c0_43, %c0_44, %c0_45, %c0_46], %107 {strides = array<i32>} : memref<1x1x8x128xf32, #tpu.memory_space<vmem>>, vector<1x1x8x128xf32>,
    } else {
    }
    return
  }
  func.func @transform_0(%arg0: i32, %arg1: i32, %arg2: i32) -> (i32, i32) {
    %c0_i32 = arith.constant 0 : i32
    %c0_i32_0 = arith.constant 0 : i32
    %c0_i32_1 = arith.constant 0 : i32
    return %c0_i32, %c0_i32_0 : i32, i32
  }
  func.func @transform_1(%arg0: i32, %arg1: i32, %arg2: i32) -> (i32, i32, i32) {
    %c0_i32 = arith.constant 0 : i32
    %c0_i32_0 = arith.constant 0 : i32
    return %arg0, %c0_i32, %arg1 : i32, i32, i32
  }
  func.func @transform_2(%arg0: i32, %arg1: i32, %arg2: i32) -> (i32, i32, i32) {
    %c0_i32 = arith.constant 0 : i32
    %c0_i32_0 = arith.constant 0 : i32
    return %arg0, %arg2, %c0_i32 : i32, i32, i32
  }
  func.func @transform_3(%arg0: i32, %arg1: i32, %arg2: i32) -> (i32, i32, i32, i32) {
    %c0_i32 = arith.constant 0 : i32
    %c0_i32_0 = arith.constant 0 : i32
    %c0_i32_1 = arith.constant 0 : i32
    return %arg0, %arg1, %c0_i32, %c0_i32_0 : i32, i32, i32, i32
  }
}

</mosaic_0001>

<bundles_post_ra>
// kernel: tpu_custom_call.1
= control target key start
LH: loop header
LB: loop body
LE: loop exit
PB: predicated region body
PF: predicated region fallthrough
CT: control target
= control target key end

     0   :  { %8 = vsyncpa [#allocation6], 0  ;;  %s3267_s0 = inlined_call_operand.vmem [shape: bf16[128,128], index: 0, kind: input, shape index: {}]   ;;  %s3268_s1 = inlined_call_operand.vmem [shape: f32[2,6,128], index: 1, kind: input, shape index: {}]   ;;  %s3269_s2 = inlined_call_operand.vmem [shape: f32[2,128,6], index: 2, kind: input, shape index: {}]   ;;  %s3270_s3 = inlined_call_operand.hbm [shape: f32[2,1,8,128], index: 3, kind: output, shape index: {}]  }
   0x1   :  { %10 = vsyncpa [#allocation6 + $0x1], 0  ;;  %s2006_s12 = smov 0   ;;  %s2008_s13 = smov 0  }
   0x2   :  { %s2010_s14 = smov 0   ;;  %s2012_s15 = smov 0  }
   0x3   :  { %s2014_s16 = smov 0   ;;  %s2016_s17 = smov 0  }
   0x4 LB: > { %s1676_s18 = sadd.s32 4294967295, %s1977_s17   ;;  %s1677_s19 = sadd.s32 4294967294, %s1977_s17   ;;  %s1977_s17 = sphi %s2016_s17, %s16_s17   ;;  %s1973_s16 = sphi %s2014_s16, %s3385_s16   ;;  %s1969_s15 = sphi %s2012_s15, %s3384_s15   ;;  %s1965_s14 = sphi %s2010_s14, %s3383_s14   ;;  %s1961_s13 = sphi %s2008_s13, %s3382_s13   ;;  %s1957_s12 = sphi %s2006_s12, %s3381_s12  }
   0x5   : > { %s35_s20 = sadd.s32 1, %s1973_s16  ;;  %s121_s21 = sadd.s32 1, %s1965_s14 }
   0x6   : > { %p37_p0 = scmp.ge.s32.totalorder %s35_s20, 2  ;;  %p131_p1 = scmp.ne.s32.totalorder %s1965_s14, %s1961_s13 }
   0x7   : > { %p132_p2 = scmp.eq.s32.totalorder %s1676_s18, 1  ;;  %p137_p3 = scmp.ne.s32.totalorder %s1961_s13, %s1957_s12 }
   0x8   : > { %s3387_s20 = smov (%p37_p0, %s35_s20), 0  ;;  %p138_p5 = scmp.eq.s32.totalorder %s1677_s19, 1 }
   0x9   : > { %p2046_p4 = por %p132_p2, %p131_p1  ;;  %s116_s23 = ssub.s32 %s1973_s16, %s3387_s20 }
   0xa   : > { %p1680_p6 = scmp.ge.s32.totalorder %s1977_s17, 1  ;;  %p119_p7 = scmp.eq.s32.totalorder %s116_s23, 0 }
   0xb   : > { %p2053_p8 = por %p138_p5, %p137_p3  ;;  %p182_p9 = scmp.lt.s32.totalorder %s1977_s17, 3 }
   0xc   : > { %s2059_s25 = scalar_select %p119_p7, %s1965_s14, %s121_s21  }
   0xd   : > { %p183_p10 = pnand %p1680_p6, %p182_p9 }
   0xf   : > { %186 = sbr.rel (%p183_p10) target bundleno = 686 (0x2ae), region = 32 }
  0x14   : > { %p217_p11 = scmp.lt.s32.totalorder %s1969_s15, 1  ;;  %v1979_v0 = vmov 0   ;;  %v1980_v17 = vmov 1   ;;  %v1981_v18 = vmov 2   ;;  %v1982_v27 = vmov 4   ;;  %s1734_s9 = sshll.u32 %s1969_s15, 3 }
  0x15   : > { %1836 = vset.pattern.permute.xlu2 %v1979_v0  ;;  %1835 = vset.pattern.permute.xlu1 %v1979_v0  ;;  %v1983_v34 = vmov 3   ;;  %v1984_v52 = vmov 0.0   ;;  %s1579_s18 = scalar_lea.hbm %s3270_s3, %s1734_s9 }
  0x16   : > { %1834 = vset.pattern.permute.xlu0 %v1979_v0  ;;  %s2063_s26 = scalar_select %p217_p11, %s1969_s15, 1  ;;  %238 = vst [vmem:[#allocation2] sm:$0x1] %v1984_v52 }
  0x17   : > { %239 = vst [vmem:[#allocation3] sm:$0x1] %v1984_v52  ;;  %s1583_s23 = sshll.u32 %s1579_s18, 4  ;;  %s1584_s23 = int_to_ptr.hbm [resolvable:$true] %s1583_s23 }
  0x18   : > { %s1737_s27 = sshll.u32 %s2063_s26, 7  ;;  %s1682_s4 = sshll.u32 %s2063_s26, 3  ;;  %240 = vst [vmem:[#allocation4] sm:$0x1] %v1984_v52 }
  0x19   : > { %s2069_s30 = scalar_lea.vmem %s3269_s2, %s1737_s27  ;;  %s223_s7 = scalar_lea.vmem %s3268_s1, %s1682_s4 }
  0x1a   : > { %v2072_v1 = vld [vmem:[%s2069_s30 + $0x20] sm:$0xff]  ;;  %v2075_v2 = vld [vmem:[%s2069_s30 + $0x10] sm:$0xff]  ;;  %v2084_v4 = vld [vmem:[%s2069_s30 + $0x28] sm:$0xff]  ;;  %s1913_s28 = sshra.s32 %s1584_s23, 4  ;;  %s1919_s4 = scalar_lea.hbm %s3270_s3, 16  ;;  %s1914_s28 = int_to_ptr.hbm [resolvable:$true] %s1913_s28 }
  0x1b   : > { %280 = vperm.xlu2 %1836, %v2072_v1   ;;  %270 = vperm.xlu1 %1835, %v2075_v2   ;;  %v2080_v3 = vld [vmem:[%s2069_s30] sm:$0xff]  ;;  %v2087_v5 = vld [vmem:[%s2069_s30 + $0x18] sm:$0xff]  ;;  %v2090_v6 = vld [vmem:[%s2069_s30 + $0x8] sm:$0xff]  ;;  %s1915_s29 = scalar_lea.hbm %s1914_s28, 8  ;;  %p1920_p1 = scmp.lt.s32.totalorder %s1914_s28, %s3270_s3 }
  0x1c   : > { %260 = vperm.xlu0 %1834, %v2080_v3   ;;  %v2096_v7 = vld [vmem:[%s2069_s30 + $0x40] sm:$0xff]  ;;  %v2099_v8 = vld [vmem:[%s2069_s30 + $0x38] sm:$0xff]  ;;  %v2102_v9 = vld [vmem:[%s2069_s30 + $0x30] sm:$0xff]  ;;  %p1916_p12 = scmp.ne.s32.totalorder %s1914_s28, %s1915_s29  ;;  %p1921_p2 = scmp.lt.s32.totalorder %s1919_s4, %s1915_s29 }
  0x1d   : > { %v2108_v10 = vld [vmem:[%s2069_s30 + $0x58] sm:$0xff]  ;;  %v2111_v11 = vld [vmem:[%s2069_s30 + $0x50] sm:$0xff]  ;;  %v2114_v12 = vld [vmem:[%s2069_s30 + $0x48] sm:$0xff] }
  0x1e   : > { %v2120_v13 = vld [vmem:[%s2069_s30 + $0x70] sm:$0xff]  ;;  %v2123_v14 = vld [vmem:[%s2069_s30 + $0x68] sm:$0xff]  ;;  %v2126_v15 = vld [vmem:[%s2069_s30 + $0x60] sm:$0xff]  ;;  %p1917_p13 = pnand %p1916_p12, %p2046_p4  ;;  %p1922_p3 = por %p1921_p2, %p1920_p1 }
  0x1f   : > { %v2132_v16 = vld [vmem:[%s2069_s30 + $0x78] sm:$0xff]  ;;  %v2182_v29 = vld [vmem:[%s223_s7] sm:$0x3f]  ;;  %s214_s7 = sand.u32 1, %s1961_s13  }
  0x20   : > { %v2185_v30 = vperm.slane %v2182_v29, 0  ;;  %v2188_v31 = vperm.slane %v2182_v29, 1  ;;  %s1681_s8 = sshll.u32 %s214_s7, 3  ;;  %s1568_s27 = scalar_lea.sflag [#allocation6], %s214_s7 }
  0x21   : > { %s216_s19 = scalar_lea.vmem [#allocation5], %s1681_s8  ;;  %p1918_p0 = pneg %p1917_p13 }
  0x22   : > { %s1581_s21 = sshll.u32 %s216_s19, 4  ;;  %s1582_s21 = int_to_ptr.vmem [resolvable:$true] %s1581_s21 }
  0x23   : > { %285 = vperm.xlu2 %1836, %v2084_v4   ;;  %275 = vperm.xlu1 %1835, %v2087_v5   ;;  %p1923_p5 = pnand %p1922_p3, %p1918_p0 }
  0x24   : > { %265 = vperm.xlu0 %1834, %v2090_v6  }
  0x2b   : > { %300 = vperm.xlu2 %1836, %v2096_v7   ;;  %295 = vperm.xlu1 %1835, %v2099_v8  }
  0x2c   : > { %290 = vperm.xlu0 %1834, %v2102_v9  }
  0x33   : > { %315 = vperm.xlu2 %1836, %v2108_v10   ;;  %310 = vperm.xlu1 %1835, %v2111_v11  }
  0x34   : > { %305 = vperm.xlu0 %1834, %v2114_v12  }
  0x3b   : > { %330 = vperm.xlu2 %1836, %v2120_v13   ;;  %325 = vperm.xlu1 %1835, %v2123_v14  }
  0x3c   : > { %320 = vperm.xlu0 %1834, %v2126_v15  }
  0x43   : > { %1838 = vset.pattern.permute.xlu2 %v1980_v17  ;;  %1837 = vset.pattern.permute.xlu1 %v1980_v17 }
  0x44   : > { %335 = vperm.xlu0 %1834, %v2132_v16   ;;  %392 = vperm.xlu2 %1838, %v2090_v6  }
  0x45   : > { %388 = vperm.xlu1 %1837, %v2080_v3  }
  0x4c   : > { %1839 = vset.pattern.permute.xlu0 %v1980_v17  ;;  %404 = vperm.xlu2 %1838, %v2072_v1  }
  0x4d   : > { %400 = vperm.xlu1 %1837, %v2087_v5   ;;  %396 = vperm.xlu0 %1839, %v2075_v2  }
  0x54   : > { %412 = vperm.xlu2 %1838, %v2102_v9  }
  0x55   : > { %408 = vperm.xlu1 %1837, %v2084_v4   ;;  %416 = vperm.xlu0 %1839, %v2099_v8  }
  0x5c   : > { %424 = vperm.xlu2 %1838, %v2114_v12  }
  0x5d   : > { %420 = vperm.xlu1 %1837, %v2096_v7   ;;  %428 = vperm.xlu0 %1839, %v2111_v11  }
  0x64   : > { %436 = vperm.xlu2 %1838, %v2126_v15  }
  0x65   : > { %432 = vperm.xlu1 %1837, %v2108_v10   ;;  %440 = vperm.xlu0 %1839, %v2123_v14  }
  0x6c   : > { %448 = vperm.xlu2 %1838, %v2132_v16  }
  0x6d   : > { %444 = vperm.xlu1 %1837, %v2120_v13   ;;  %1840 = vset.pattern.permute.xlu0 %v1981_v18 }
  0x6e   : > { %501 = vperm.xlu0 %1840, %v2080_v3  }
  0x74   : > { %1842 = vset.pattern.permute.xlu2 %v1981_v18 }
  0x75   : > { %1841 = vset.pattern.permute.xlu1 %v1981_v18  ;;  %v281_v19 = vpop.permute.xlu2 %280  ;;  %561 = vperm.xlu2 %1842, %v2132_v16  }
  0x76   : > { %557 = vperm.xlu1 %1841, %v2120_v13   ;;  %541 = vperm.xlu0 %1840, %v2111_v11   ;;  %v343_v41 = vsub.f32 %v281_v19, %v2185_v30 }
  0x78   : > { %v359_v46 = vmul.f32 %v343_v41, %v343_v41 }
  0x7d   : > { %v2155_v20 = vpop.permute.xlu2 %285  ;;  %553 = vperm.xlu2 %1842, %v2123_v14  }
  0x7e   : > { %549 = vperm.xlu1 %1841, %v2126_v15   ;;  %537 = vperm.xlu0 %1840, %v2114_v12  }
  0x85   : > { %v2160_v21 = vpop.permute.xlu2 %300  ;;  %533 = vperm.xlu2 %1842, %v2096_v7  }
  0x86   : > { %545 = vperm.xlu1 %1841, %v2108_v10   ;;  %517 = vperm.xlu0 %1840, %v2072_v1  }
  0x8d   : > { %v2165_v22 = vpop.permute.xlu2 %315  ;;  %v2167_v23 = vpop.permute.xlu1 %270  ;;  %529 = vperm.xlu2 %1842, %v2099_v8  }
  0x8e   : > { %525 = vperm.xlu1 %1841, %v2102_v9   ;;  %513 = vperm.xlu0 %1840, %v2087_v5   ;;  %v261_v24 = vpop.permute.xlu0 %260 }
  0x8f   : > { %v339_v53 = vsub.f32 %v261_v24, %v2185_v30 }
  0x91   : > { %v355_v58 = vmul.f32 %v339_v53, %v339_v53 }
  0x95   : > { %v2176_v25 = vpop.permute.xlu2 %330  ;;  %v276_v26 = vpop.permute.xlu1 %275  ;;  %509 = vperm.xlu2 %1842, %v2075_v2  }
  0x96   : > { %521 = vperm.xlu1 %1841, %v2084_v4   ;;  %1845 = vset.pattern.permute.xlu0 %v1982_v27  ;;  %v266_v28 = vpop.permute.xlu0 %265  ;;  %v342_v61 = vsub.f32 %v276_v26, %v2185_v30 }
  0x97   : > { %972 = vperm.xlu0 %1845, %v2080_v3   ;;  %v340_v32 = vsub.f32 %v266_v28, %v2185_v30 }
  0x98   : > { %v358_v18 = vmul.f32 %v342_v61, %v342_v61 }
  0x99   : > { %v356_v38 = vmul.f32 %v340_v32, %v340_v32 }
  0x9d   : > { %v2191_v33 = vpop.permute.xlu1 %295  ;;  %1843 = vset.pattern.permute.xlu2 %v1983_v34 }
  0x9e   : > { %505 = vperm.xlu1 %1841, %v2090_v6   ;;  %v2195_v35 = vpop.permute.xlu0 %290  ;;  %v393_v36 = vpop.permute.xlu2 %392  ;;  %859 = vperm.xlu2 %1843, %v2080_v3  }
  0x9f   : > { %v453_v37 = vsub.f32 %v393_v36, %v2188_v31  ;;  %984 = vperm.xlu0 %1845, %v2087_v5  }
  0xa1   : > { %v469_v39 = vmul.f32 %v453_v37, %v453_v37 }
  0xa3   : > { %v2200_v40 = vadd.f32 %v469_v39, %v356_v38  ;;  %v1985_v38 = vmov 5  }
  0xa5   : > { %v2203_v42 = vpop.permute.xlu1 %310 }
  0xa6   : > { %1844 = vset.pattern.permute.xlu1 %v1983_v34  ;;  %v2206_v43 = vpop.permute.xlu0 %305  ;;  %v405_v44 = vpop.permute.xlu2 %404  ;;  %871 = vperm.xlu2 %1843, %v2087_v5  }
  0xa7   : > { %v456_v45 = vsub.f32 %v405_v44, %v2188_v31  ;;  %867 = vperm.xlu1 %1844, %v2075_v2   ;;  %1000 = vperm.xlu0 %1845, %v2099_v8  }
  0xa9   : > { %v472_v47 = vmul.f32 %v456_v45, %v456_v45 }
  0xab   : > { %v2212_v48 = vadd.f32 %v472_v47, %v359_v46  ;;  %v2267_v46 = vperm.slane %v2182_v29, 2 }
  0xad   : > { %v2214_v49 = vpop.permute.xlu1 %325 }
  0xae   : > { %v2216_v50 = vpop.permute.xlu0 %320  ;;  %v2218_v51 = vpop.permute.xlu2 %412  ;;  %879 = vperm.xlu2 %1843, %v2084_v4  }
  0xaf   : > { %875 = vperm.xlu1 %1844, %v2072_v1   ;;  %1853 = vset.pattern.permute.xlu0 %v1983_v34 }
  0xb0   : > { %863 = vperm.xlu0 %1853, %v2090_v6  }
  0xb6   : > { %v336_v54 = vpop.permute.xlu0 %335  ;;  %v2226_v55 = vpop.permute.xlu2 %424  ;;  %891 = vperm.xlu2 %1843, %v2096_v7  }
  0xb7   : > { %887 = vperm.xlu1 %1844, %v2099_v8   ;;  %v389_v56 = vpop.permute.xlu1 %388 }
  0xb8   : > { %v452_v57 = vsub.f32 %v389_v56, %v2188_v31  ;;  %883 = vperm.xlu0 %1853, %v2102_v9  }
  0xba   : > { %v468_v59 = vmul.f32 %v452_v57, %v452_v57 }
  0xbc   : > { %v2234_v60 = vadd.f32 %v468_v59, %v355_v58 }
  0xbe   : > { %v2237_v62 = vpop.permute.xlu2 %436  ;;  %903 = vperm.xlu2 %1843, %v2108_v10  }
  0xbf   : > { %899 = vperm.xlu1 %1844, %v2111_v11   ;;  %v401_v63 = vpop.permute.xlu1 %400  ;;  %v2241_v0 = vpop.permute.xlu0 %396 }
  0xc0   : > { %v455_v17 = vsub.f32 %v401_v63, %v2188_v31  ;;  %895 = vperm.xlu0 %1853, %v2114_v12   ;;  %v352_v63 = vsub.f32 %v2214_v49, %v2185_v30  ;;  %v464_v49 = vsub.f32 %v2237_v62, %v2188_v31 }
  0xc2   : > { %v471_v19 = vmul.f32 %v455_v17, %v455_v17  ;;  %v353_v17 = vsub.f32 %v2176_v25, %v2185_v30 }
  0xc4   : > { %v2245_v24 = vadd.f32 %v471_v19, %v358_v18 }
  0xc6   : > { %v449_v28 = vpop.permute.xlu2 %448  ;;  %1847 = vset.pattern.permute.xlu2 %v1982_v27 }
  0xc7   : > { %1846 = vset.pattern.permute.xlu1 %v1982_v27  ;;  %v2249_v26 = vpop.permute.xlu1 %408  ;;  %v2251_v32 = vpop.permute.xlu0 %416  ;;  %980 = vperm.xlu2 %1847, %v2075_v2  }
  0xc8   : > { %976 = vperm.xlu1 %1846, %v2090_v6   ;;  %907 = vperm.xlu0 %1853, %v2126_v15  }
  0xcf   : > { %v2256_v36 = vpop.permute.xlu1 %420  ;;  %v429_v37 = vpop.permute.xlu0 %428  ;;  %1849 = vset.pattern.permute.xlu2 %v1985_v38 }
  0xd0   : > { %v562_v39 = vpop.permute.xlu2 %561  ;;  %1848 = vset.pattern.permute.xlu1 %v1985_v38  ;;  %1858 = vset.pattern.permute.xlu0 %v1985_v38 }
  0xd1   : > { %1089 = vperm.xlu2 %1849, %v2090_v6   ;;  %1085 = vperm.xlu1 %1848, %v2080_v3   ;;  %v467_v6 = vsub.f32 %v449_v28, %v2188_v31  ;;  %v354_v3 = vsub.f32 %v336_v54, %v2185_v30 }
  0xd2   : > { %1097 = vperm.xlu0 %1858, %v2087_v5   ;;  %v580_v5 = vsub.f32 %v562_v39, %v2267_v46 }
  0xd3   : > { %v483_v47 = vmul.f32 %v467_v6, %v467_v6  ;;  %v370_v58 = vmul.f32 %v354_v3, %v354_v3  ;;  %v368_v6 = vmul.f32 %v352_v63, %v352_v63  ;;  %v480_v63 = vmul.f32 %v464_v49, %v464_v49 }
  0xd4   : > { %v596_v59 = vmul.f32 %v580_v5, %v580_v5 }
  0xd5   : > { %v499_v61 = vadd.f32 %v483_v47, %v370_v58  ;;  %v369_v47 = vmul.f32 %v353_v17, %v353_v17 }
  0xd7   : > { %v2264_v41 = vpop.permute.xlu1 %432  ;;  %v441_v44 = vpop.permute.xlu0 %440  ;;  %v2289_v18 = vadd.f32 %v596_v59, %v499_v61 }
  0xd8   : > { %v554_v45 = vpop.permute.xlu2 %553 }
  0xd9   : > { %1850 = vset.pattern.permute.xlu2 %v1982_v27  ;;  %1093 = vperm.xlu1 %1848, %v2075_v2   ;;  %v465_v2 = vsub.f32 %v441_v44, %v2188_v31  ;;  %3297 = vst [vmem:[#allocation8_spill] sm:$0xff] %v2289_v18  ;;  %v578_v28 = vsub.f32 %v554_v45, %v2267_v46  ;;  %vm3281_vm0 = vcmp.lt.f32.partialorder %v2289_v18, 0.25 }
  0xda   : > { %988 = vperm.xlu2 %1850, %v2072_v1   ;;  %1117 = vperm.xlu0 %1858, %v2096_v7   ;;  %v347_v44 = vsub.f32 %v2160_v21, %v2185_v30  ;;  %v348_v45 = vsub.f32 %v2206_v43, %v2185_v30  ;;  %v351_v21 = vsub.f32 %v2216_v50, %v2185_v30  ;;  %v2313_v50 = vsel %vm3281_vm0, 1.0, %v1984_v52 }
  0xdb   : > { %v481_v19 = vmul.f32 %v465_v2, %v465_v2  ;;  %v594_v59 = vmul.f32 %v578_v28, %v578_v28  ;;  %v460_v28 = vsub.f32 %v2256_v36, %v2188_v31 }
  0xdc   : > { %v363_v62 = vmul.f32 %v347_v44, %v347_v44  ;;  %v367_v44 = vmul.f32 %v351_v21, %v351_v21 }
  0xdd   : > { %v497_v58 = vadd.f32 %v481_v19, %v368_v6  ;;  %v346_v19 = vsub.f32 %v2191_v33, %v2185_v30 }
  0xdf   : > { %v445_v53 = vpop.permute.xlu1 %444 }
  0xe0   : > { %v534_v56 = vpop.permute.xlu2 %533  ;;  %v2276_v57 = vpop.permute.xlu0 %501  ;;  %v466_v54 = vsub.f32 %v445_v53, %v2188_v31 }
  0xe1   : > { %1851 = vset.pattern.permute.xlu1 %v1982_v27 }
  0xe2   : > { %1852 = vset.pattern.permute.xlu2 %v1985_v38  ;;  %992 = vperm.xlu1 %1851, %v2084_v4   ;;  %v482_v39 = vmul.f32 %v466_v54, %v466_v54  ;;  %v349_v54 = vsub.f32 %v2203_v42, %v2185_v30  ;;  %v364_v42 = vmul.f32 %v348_v45, %v348_v45 }
  0xe3   : > { %1101 = vperm.xlu2 %1852, %v2072_v1   ;;  %1133 = vperm.xlu0 %1858, %v2126_v15   ;;  %v461_v1 = vsub.f32 %v2226_v55, %v2188_v31  ;;  %v462_v55 = vsub.f32 %v429_v37, %v2188_v31  ;;  %v350_v37 = vsub.f32 %v2165_v22, %v2185_v30 }
  0xe4   : > { %v498_v2 = vadd.f32 %v482_v39, %v369_v47  ;;  %v2325_v39 = vadd.f32 %v594_v59, %v497_v58  ;;  %v365_v22 = vmul.f32 %v349_v54, %v349_v54  ;;  %v573_v47 = vsub.f32 %v534_v56, %v2267_v46 }
  0xe5   : > { %v477_v43 = vmul.f32 %v461_v1, %v461_v1  ;;  %v478_v6 = vmul.f32 %v462_v55, %v462_v55  ;;  %v676_v1 = vpack.c.bf16 %v2313_v50, %v2313_v50  ;;  %v476_v59 = vmul.f32 %v460_v28, %v460_v28 }
  0xe6   : > { %3299 = vst [vmem:[#allocation10_spill] sm:$0xff] %v2325_v39  ;;  %vm3283_vm2 = vcmp.lt.f32.partialorder %v2325_v39, 0.25  ;;  %v463_v54 = vsub.f32 %v2264_v41, %v2188_v31 }
  0xe8   : > { %v530_v3 = vpop.permute.xlu2 %529  ;;  %v558_v5 = vpop.permute.xlu1 %557 }
  0xe9   : > { %v579_v25 = vsub.f32 %v558_v5, %v2267_v46  ;;  %v542_v53 = vpop.permute.xlu0 %541  ;;  %v493_v5 = vadd.f32 %v477_v43, %v364_v42  ;;  %v1698_v42 = vsel %vm3283_vm2, 1.0, %v1984_v52  ;;  %v572_v28 = vsub.f32 %v530_v3, %v2267_v46 }
  0xea   : > { %996 = vperm.xlu1 %1851, %v2102_v9  }
  0xeb   : > { %v595_v61 = vmul.f32 %v579_v25, %v579_v25  ;;  %1105 = vperm.xlu2 %1852, %v2084_v4   ;;  %1863 = vset.pattern.permute.xlu0 %v1982_v27  ;;  %v575_v4 = vsub.f32 %v542_v53, %v2267_v46  ;;  %v496_v25 = vadd.f32 %v480_v63, %v367_v44 }
  0xec   : > { %1032 = vperm.xlu0 %1863, %v2132_v16   ;;  %v459_v53 = vsub.f32 %v2251_v32, %v2188_v31  ;;  %v589_v32 = vmul.f32 %v573_v47, %v573_v47 }
  0xed   : > { %v2318_v17 = vadd.f32 %v595_v61, %v498_v2  ;;  %v591_v21 = vmul.f32 %v575_v4, %v575_v4  ;;  %v494_v2 = vadd.f32 %v478_v6, %v365_v22  ;;  %v772_v61 = vunpack.c.l.b16 %v676_v1 }
  0xee   : > { %v492_v6 = vadd.f32 %v476_v59, %v363_v62  ;;  %v366_v22 = vmul.f32 %v350_v37, %v350_v37  ;;  %v475_v47 = vmul.f32 %v459_v53, %v459_v53  ;;  %v588_v62 = vmul.f32 %v572_v28, %v572_v28 }
  0xef   : > { %3298 = vst [vmem:[#allocation9_spill] sm:$0xff] %v2318_v17  ;;  %vm3282_vm1 = vcmp.lt.f32.partialorder %v2318_v17, 0.25  ;;  %v2352_v44 = vadd.f32 %v591_v21, %v494_v2  ;;  %v458_v53 = vsub.f32 %v2218_v51, %v2188_v31  ;;  %v345_v59 = vsub.f32 %v2195_v35, %v2185_v30 }
  0xf0   : > { %v1699_v33 = vsel %vm3282_vm1, 1.0, %v1984_v52  ;;  %v2334_v49 = vpop.permute.xlu2 %509  ;;  %v550_v36 = vpop.permute.xlu1 %549 }
  0xf1   : > { %v675_v45 = vpack.c.bf16 %v1699_v33, %v1699_v33  ;;  %v538_v58 = vpop.permute.xlu0 %537  ;;  %v577_v55 = vsub.f32 %v550_v36, %v2267_v46  ;;  %3300 = vst [vmem:[#allocation11_spill] sm:$0xff] %v2352_v44  ;;  %v479_v33 = vmul.f32 %v463_v54, %v463_v54  ;;  %v674_v36 = vpack.c.bf16 %v1698_v42, %v1698_v42 }
  0xf2   : > { %v574_v56 = vsub.f32 %v538_v58, %v2267_v46  ;;  %1854 = vset.pattern.permute.xlu1 %v1985_v38  ;;  %vm3286_vm4 = vcmp.lt.f32.partialorder %v2352_v44, 0.25 }
  0xf3   : > { %v771_v43 = vunpack.c.l.b16 %v675_v45  ;;  %1855 = vset.pattern.permute.xlu2 %v1982_v27  ;;  %1109 = vperm.xlu1 %1854, %v2102_v9   ;;  %v593_v63 = vmul.f32 %v577_v55, %v577_v55  ;;  %v2358_v45 = vadd.f32 %v589_v32, %v492_v6  ;;  %v344_v32 = vsub.f32 %v2155_v20, %v2185_v30 }
  0xf4   : > { %v590_v4 = vmul.f32 %v574_v56, %v574_v56  ;;  %1004 = vperm.xlu2 %1855, %v2096_v7   ;;  %1865 = vset.pattern.permute.xlu0 %v1985_v38  ;;  %v362_v7 = vmul.f32 %v346_v19, %v346_v19  ;;  %v495_v56 = vadd.f32 %v479_v33, %v366_v22 }
  0xf5   : > { %v780_v41 = vpack.c.b16 %v772_v61, %v771_v43  ;;  %v2354_v1 = vadd.f32 %v593_v63, %v496_v25  ;;  %v341_v25 = vsub.f32 %v2167_v23, %v2185_v30  ;;  %v770_v61 = vunpack.c.l.b16 %v674_v36 }
  0xf6   : > { %v2356_v9 = vadd.f32 %v590_v4, %v493_v5  ;;  %v491_v55 = vadd.f32 %v475_v47, %v362_v7  ;;  %vm3294_vm6 = vcmp.lt.f32.partialorder %v2358_v45, 0.25  ;;  %v1695_v23 = vsel %vm3286_vm4, 1.0, %v1984_v52 }
  0xf7   : > { %3301 = vst [vmem:[#allocation12_spill] sm:$0xff] %v2354_v1  ;;  %789 = vmatpush.bf16.msra.mxu0 %v780_v41  ;;  %1746 = vmatpush.bf16.msra.mxu1 %v780_v41  ;;  %vm3284_vm3 = vcmp.lt.f32.partialorder %v2354_v1, 0.25  ;;  %v474_v63 = vmul.f32 %v458_v53, %v458_v53  ;;  %v454_v4 = vsub.f32 %v2241_v0, %v2188_v31  ;;  %v1693_v22 = vsel %vm3294_vm6, 1.0, %v1984_v52 }
  0xf8   : > { %1747 = vmatpush.bf16.msra.mxu2 %v780_v41  ;;  %1748 = vmatpush.bf16.msra.mxu3 %v780_v41  ;;  %v546_v3 = vpop.permute.xlu1 %545  ;;  %v2361_v21 = vpop.permute.xlu2 %859  ;;  %v1697_v37 = vsel %vm3284_vm3, 1.0, %v1984_v52  ;;  %vm3287_vm5 = vcmp.lt.f32.partialorder %v2356_v9, 0.25  ;;  %v2381_v51 = vadd.f32 %v588_v62, %v491_v55  ;;  %v357_v28 = vmul.f32 %v341_v25, %v341_v25 }
  0xf9   : > { %v576_v5 = vsub.f32 %v546_v3, %v2267_v46  ;;  %v518_v19 = vpop.permute.xlu0 %517  ;;  %v673_v58 = vpack.c.bf16 %v1697_v37, %v1697_v37  ;;  %v1694_v35 = vsel %vm3287_vm5, 1.0, %v1984_v52  ;;  %v361_v41 = vmul.f32 %v345_v59, %v345_v59 }
  0xfa   : > { %v671_v6 = vpack.c.bf16 %v1695_v23, %v1695_v23  ;;  %v567_v47 = vsub.f32 %v2334_v49, %v2267_v46  ;;  %v670_v33 = vpack.c.bf16 %v1694_v35, %v1694_v35  ;;  %vm3288_vm8 = vcmp.lt.f32.partialorder %v2381_v51, 0.25 }
  0xfb   : > { %v592_v2 = vmul.f32 %v576_v5, %v576_v5  ;;  %1113 = vperm.xlu1 %1854, %v2099_v8   ;;  %v769_v54 = vunpack.c.l.b16 %v673_v58  ;;  %v569_v8 = vsub.f32 %v518_v19, %v2267_v46  ;;  %v490_v49 = vadd.f32 %v474_v63, %v361_v41 }
  0xfc   : > { %1008 = vperm.xlu2 %1855, %v2114_v12   ;;  %v470_v37 = vmul.f32 %v454_v4, %v454_v4  ;;  %v457_v5 = vsub.f32 %v2249_v26, %v2188_v31  ;;  %v669_v25 = vpack.c.bf16 %v1693_v22, %v1693_v22  ;;  %v767_v53 = vunpack.c.l.b16 %v671_v6 }
  0xfd   : > { %v2386_v43 = vadd.f32 %v592_v2, %v495_v56  ;;  %v779_v42 = vpack.c.b16 %v770_v61, %v769_v54  ;;  %v585_v36 = vmul.f32 %v569_v8, %v569_v8  ;;  %v565_v55 = vsub.f32 %v2276_v57, %v2267_v46 }
  0xfe   : > { %v1692_v56 = vsel %vm3288_vm8, 1.0, %v1984_v52  ;;  %v583_v2 = vmul.f32 %v567_v47, %v567_v47  ;;  %v766_v31 = vunpack.c.l.b16 %v670_v33  ;;  %v486_v57 = vadd.f32 %v470_v37, %v357_v28 }
  0xff   : > { %3302 = vst [vmem:[#allocation13_spill] sm:$0xff] %v2386_v43  ;;  %vm3285_vm7 = vcmp.lt.f32.partialorder %v2386_v43, 0.25  ;;  %790 = vmatpush.bf16.msra.mxu0 %v779_v42  ;;  %1749 = vmatpush.bf16.msra.mxu1 %v779_v42  ;;  %v2418_v26 = vadd.f32 %v585_v36, %v2212_v48  ;;  %v473_v35 = vmul.f32 %v457_v5, %v457_v5  ;;  %v765_v8 = vunpack.c.l.b16 %v669_v25 }
 0x100   : > { %v1696_v20 = vsel %vm3285_vm7, 1.0, %v1984_v52  ;;  %v526_v30 = vpop.permute.xlu1 %525  ;;  %v2402_v0 = vpop.permute.xlu2 %871  ;;  %1750 = vmatpush.bf16.msra.mxu2 %v779_v42  ;;  %1751 = vmatpush.bf16.msra.mxu3 %v779_v42  ;;  %v668_v63 = vpack.c.bf16 %v1692_v56, %v1692_v56  ;;  %v360_v42 = vmul.f32 %v344_v32, %v344_v32  ;;  %v581_v41 = vmul.f32 %v565_v55, %v565_v55 }
 0x101   : > { %v672_v7 = vpack.c.bf16 %v1696_v20, %v1696_v20  ;;  %v571_v3 = vsub.f32 %v526_v30, %v2267_v46  ;;  %v514_v62 = vpop.permute.xlu0 %513  ;;  %v2427_v48 = vadd.f32 %v583_v2, %v486_v57  ;;  %vm617_vm10 = vcmp.lt.f32.partialorder %v2418_v26, 0.25 }
 0x102   : > { %v568_v19 = vsub.f32 %v514_v62, %v2267_v46  ;;  %v777_v47 = vpack.c.b16 %v766_v31, %v765_v8  ;;  %v489_v33 = vadd.f32 %v473_v35, %v360_v42  ;;  %v764_v32 = vunpack.c.l.b16 %v668_v63 }
 0x103   : > { %v768_v58 = vunpack.c.l.b16 %v672_v7  ;;  %v587_v59 = vmul.f32 %v571_v3, %v571_v3  ;;  %1856 = vset.pattern.permute.xlu1 %v1982_v27  ;;  %v1689_v7 = vsel %vm617_vm10, 1.0, %v1984_v52  ;;  %v2441_v36 = vadd.f32 %v581_v41, %v2234_v60 }
 0x104   : > { %v584_v61 = vmul.f32 %v568_v19, %v568_v19  ;;  %1012 = vperm.xlu1 %1856, %v2111_v11   ;;  %1857 = vset.pattern.permute.xlu2 %v1985_v38  ;;  %vm615_vm12 = vcmp.lt.f32.partialorder %v2427_v48, 0.25  ;;  %v665_v37 = vpack.c.bf16 %v1689_v7, %v1689_v7 }
 0x105   : > { %v2420_v23 = vadd.f32 %v587_v59, %v490_v49  ;;  %v778_v54 = vpack.c.b16 %v768_v58, %v767_v53  ;;  %1121 = vperm.xlu2 %1857, %v2114_v12   ;;  %v1687_v60 = vsel %vm615_vm12, 1.0, %v1984_v52  ;;  %vm613_vm14 = vcmp.lt.f32.partialorder %v2441_v36, 0.25 }
 0x106   : > { %v2425_v4 = vadd.f32 %v584_v61, %v2245_v24  ;;  %v663_v59 = vpack.c.bf16 %v1687_v60, %v1687_v60  ;;  %v761_v55 = vunpack.c.l.b16 %v665_v37  ;;  %v1685_v61 = vsel %vm613_vm14, 1.0, %v1984_v52 }
 0x107   : > { %vm3289_vm9 = vcmp.lt.f32.partialorder %v2420_v23, 0.25  ;;  %791 = vmatpush.bf16.msra.mxu0 %v778_v54  ;;  %1752 = vmatpush.bf16.msra.mxu1 %v778_v54  ;;  %v661_v35 = vpack.c.bf16 %v1685_v61, %v1685_v61 }
 0x108   : > { %v1691_v6 = vsel %vm3289_vm9, 1.0, %v1984_v52  ;;  %1753 = vmatpush.bf16.msra.mxu2 %v778_v54  ;;  %1754 = vmatpush.bf16.msra.mxu3 %v778_v54  ;;  %v522_v12 = vpop.permute.xlu1 %521  ;;  %v2432_v28 = vpop.permute.xlu2 %879  ;;  %vm3291_vm11 = vcmp.lt.f32.partialorder %v2425_v4, 0.25  ;;  %v759_v8 = vunpack.c.l.b16 %v663_v59  ;;  %v1743_v59 = vld [vmem:[%s3267_s0 + $0x28] sm:$0xff] }
 0x109   : > { %v667_v22 = vpack.c.bf16 %v1691_v6, %v1691_v6  ;;  %v570_v24 = vsub.f32 %v522_v12, %v2267_v46  ;;  %v1688_v49 = vsel %vm3291_vm11, 1.0, %v1984_v52  ;;  %v2479_v12 = vperm.slane %v2182_v29, 3 }
 0x10a   : > { %v664_v25 = vpack.c.bf16 %v1688_v49, %v1688_v49 }
 0x10b   : > { %v763_v20 = vunpack.c.l.b16 %v667_v22  ;;  %v586_v30 = vmul.f32 %v570_v24, %v570_v24  ;;  %792 = vmatpush.bf16.msra.mxu0 %v777_v47  ;;  %1755 = vmatpush.bf16.msra.mxu1 %v777_v47  ;;  %v1738_v24 = vld [vmem:[%s3267_s0] sm:$0xff] }
 0x10c   : > { %1756 = vmatpush.bf16.msra.mxu2 %v777_v47  ;;  %1757 = vmatpush.bf16.msra.mxu3 %v777_v47  ;;  %v760_v31 = vunpack.c.l.b16 %v664_v25  ;;  %v1740_v47 = vld [vmem:[%s3267_s0 + $0x10] sm:$0xff] }
 0x10d   : > { %v2444_v3 = vadd.f32 %v586_v30, %v489_v33  ;;  %1016 = vperm.xlu1 %1856, %v2108_v10   ;;  %v776_v62 = vpack.c.b16 %v764_v32, %v763_v20  ;;  %1125 = vperm.xlu2 %1857, %v2111_v11   ;;  %v1744_v33 = vld [vmem:[%s3267_s0 + $0x30] sm:$0xff]  ;;  %v2499_v32 = vperm.slane %v2182_v29, 4 }
 0x10e   : > { %v774_v41 = vpack.c.b16 %v760_v31, %v759_v8 }
 0x10f   : > { %vm3290_vm13 = vcmp.lt.f32.partialorder %v2444_v3, 0.25  ;;  %793 = vmatpush.bf16.msra.mxu0 %v776_v62  ;;  %1758 = vmatpush.bf16.msra.mxu1 %v776_v62 }
 0x110   : > { %v1690_v5 = vsel %vm3290_vm13, 1.0, %v1984_v52  ;;  %1759 = vmatpush.bf16.msra.mxu2 %v776_v62  ;;  %1760 = vmatpush.bf16.msra.mxu3 %v776_v62  ;;  %v506_v11 = vpop.permute.xlu1 %505  ;;  %v2458_v19 = vpop.permute.xlu2 %891 }
 0x111   : > { %v666_v53 = vpack.c.bf16 %v1690_v5, %v1690_v5  ;;  %v566_v58 = vsub.f32 %v506_v11, %v2267_v46  ;;  %v2471_v46 = vpop.permute.xlu0 %972 }
 0x113   : > { %v762_v56 = vunpack.c.l.b16 %v666_v53  ;;  %v582_v2 = vmul.f32 %v566_v58, %v566_v58  ;;  %v1739_v53 = vld [vmem:[%s3267_s0 + $0x8] sm:$0xff]  ;;  %v1741_v58 = vld [vmem:[%s3267_s0 + $0x18] sm:$0xff] }
 0x115   : > { %v2466_v54 = vadd.f32 %v582_v2, %v2200_v40  ;;  %1020 = vperm.xlu1 %1856, %v2126_v15   ;;  %v775_v57 = vpack.c.b16 %v762_v56, %v761_v55  ;;  %1129 = vperm.xlu2 %1857, %v2108_v10   ;;  %v757_v10 = vunpack.c.l.b16 %v661_v35  ;;  %v1745_v55 = vld [vmem:[%s3267_s0 + $0x38] sm:$0xff] }
 0x117   : > { %vm614_vm15 = vcmp.lt.f32.partialorder %v2466_v54, 0.25  ;;  %794 = vmatpush.bf16.msra.mxu0 %v775_v57  ;;  %1761 = vmatpush.bf16.msra.mxu1 %v775_v57 }
 0x118   : > { %v1686_v63 = vsel %vm614_vm15, 1.0, %v1984_v52  ;;  %1762 = vmatpush.bf16.msra.mxu2 %v775_v57  ;;  %1763 = vmatpush.bf16.msra.mxu3 %v775_v57  ;;  %v2476_v40 = vpop.permute.xlu2 %903 }
 0x119   : > { %v662_v15 = vpack.c.bf16 %v1686_v63, %v1686_v63  ;;  %v868_v42 = vpop.permute.xlu1 %867  ;;  %v2501_v7 = vpop.permute.xlu0 %984 }
 0x11a   : > { %v925_v52 = vsub.f32 %v868_v42, %v2479_v12 }
 0x11b   : > { %v758_v6 = vunpack.c.l.b16 %v662_v15  ;;  %795 = vmatpush.bf16.msra.mxu0 %v774_v41  ;;  %1764 = vmatpush.bf16.msra.mxu1 %v774_v41 }
 0x11c   : > { %1765 = vmatpush.bf16.msra.mxu2 %v774_v41  ;;  %1766 = vmatpush.bf16.msra.mxu3 %v774_v41  ;;  %v941_v62 = vmul.f32 %v925_v52, %v925_v52  ;;  %v923_v52 = vsub.f32 %v2361_v21, %v2479_v12 }
 0x11d   : > { %1859 = vset.pattern.permute.xlu1 %v1983_v34  ;;  %v773_v22 = vpack.c.b16 %v758_v6, %v757_v10  ;;  %1860 = vset.pattern.permute.xlu2 %v1982_v27  ;;  %v1742_v27 = vld [vmem:[%s3267_s0 + $0x20] sm:$0xff] }
 0x11e   : > { %911 = vperm.xlu1 %1859, %v2123_v14   ;;  %1024 = vperm.xlu2 %1860, %v2123_v14  }
 0x11f   : > { %796 = vmatpush.bf16.msra.mxu0 %v773_v22  ;;  %1767 = vmatpush.bf16.msra.mxu1 %v773_v22 }
 0x120   : > { %1768 = vmatpush.bf16.msra.mxu2 %v773_v22  ;;  %1769 = vmatpush.bf16.msra.mxu3 %v773_v22 }
 0x121   : > { %v876_v20 = vpop.permute.xlu1 %875  ;;  %v981_v30 = vpop.permute.xlu2 %980 }
 0x122   : > { %797 = vmatmul.bf16.vlgmr.msra.gmra.mxu0 %v1738_v24  ;;  %807 = vmatmul.bf16.vlgmr.msra.gmra.mxu1 %v1740_v47  ;;  %v1038_v49 = vsub.f32 %v981_v30, %v2499_v32  ;;  %v2508_v25 = vpop.permute.xlu0 %1000  ;;  %v927_v2 = vsub.f32 %v876_v20, %v2479_v12 }
 0x123   : > { %817 = vmatmul.bf16.vlgmr.msra.gmra.mxu2 %v1742_v27  ;;  %827 = vmatmul.bf16.vlgmr.msra.gmra.mxu3 %v1744_v33 }
 0x124   : > { %v1054_v37 = vmul.f32 %v1038_v49, %v1038_v49  ;;  %v943_v57 = vmul.f32 %v927_v2, %v927_v2 }
 0x126   : > { %v1070_v60 = vadd.f32 %v1054_v37, %v941_v62  ;;  %915 = vperm.xlu1 %1859, %v2120_v13   ;;  %1028 = vperm.xlu2 %1860, %v2120_v13  }
 0x129   : > { %v2506_v5 = vpop.permute.xlu1 %887 }
 0x12a   : > { %v864_v31 = vpop.permute.xlu0 %863 }
 0x12b   : > { %v1090_v11 = vpop.permute.xlu2 %1089  ;;  %v924_v35 = vsub.f32 %v864_v31, %v2479_v12 }
 0x12d   : > { %v940_v41 = vmul.f32 %v924_v35, %v924_v35 }
 0x12e   : > { %1861 = vset.pattern.permute.xlu1 %v1985_v38  ;;  %1862 = vset.pattern.permute.xlu2 %v1983_v34 }
 0x12f   : > { %1137 = vperm.xlu1 %1861, %v2123_v14   ;;  %919 = vperm.xlu2 %1862, %v2132_v16   ;;  %v2530_v14 = vperm.slane %v2182_v29, 5 }
 0x131   : > { %v2526_v56 = vpop.permute.xlu1 %899  ;;  %v1150_v63 = vsub.f32 %v1090_v11, %v2530_v14 }
 0x132   : > { %802 = vmatmul.bf16.gmra.mxu0 %v1739_v53  ;;  %812 = vmatmul.bf16.gmra.mxu1 %v1741_v58  ;;  %v884_v11 = vpop.permute.xlu0 %883 }
 0x133   : > { %822 = vmatmul.bf16.gmra.mxu2 %v1743_v59  ;;  %832 = vmatmul.bf16.gmra.mxu3 %v1745_v55  ;;  %v1166_v10 = vmul.f32 %v1150_v63, %v1150_v63 }
 0x134   : > { %v989_v34 = vpop.permute.xlu2 %988 }
 0x135   : > { %v1040_v61 = vsub.f32 %v989_v34, %v2499_v32 }
 0x137   : > { %v1056_v8 = vmul.f32 %v1040_v61, %v1040_v61  ;;  %1141 = vperm.xlu1 %1861, %v2120_v13   ;;  %1864 = vset.pattern.permute.xlu2 %v1985_v38  ;;  %v1036_v13 = vsub.f32 %v2471_v46, %v2499_v32 }
 0x138   : > { %1145 = vperm.xlu2 %1864, %v2132_v16   ;;  %v939_v16 = vmul.f32 %v923_v52, %v923_v52 }
 0x139   : > { %v1072_v15 = vadd.f32 %v1056_v8, %v943_v57  ;;  %v1052_v47 = vmul.f32 %v1036_v13, %v1036_v13 }
 0x13a   : > { %v977_v42 = vpop.permute.xlu1 %976  ;;  %v896_v55 = vpop.permute.xlu0 %895 }
 0x13b   : > { %v1037_v29 = vsub.f32 %v977_v42, %v2499_v32  ;;  %v1068_v20 = vadd.f32 %v1052_v47, %v939_v16  ;;  %v926_v42 = vsub.f32 %v2402_v0, %v2479_v12  ;;  %v931_v47 = vsub.f32 %v2458_v19, %v2479_v12 }
 0x13c   : > { %v928_v19 = vsub.f32 %v2432_v28, %v2479_v12  ;;  %v1043_v28 = vsub.f32 %v2508_v25, %v2499_v32 }
 0x13d   : > { %v1053_v6 = vmul.f32 %v1037_v29, %v1037_v29  ;;  %v1102_v22 = vpop.permute.xlu2 %1101 }
 0x13e   : > { %v1153_v35 = vsub.f32 %v1102_v22, %v2530_v14 }
 0x13f   : > { %v1069_v24 = vadd.f32 %v1053_v6, %v940_v41  ;;  %v942_v6 = vmul.f32 %v926_v42, %v926_v42 }
 0x140   : > { %v1169_v29 = vmul.f32 %v1153_v35, %v1153_v35 }
 0x141   : > { %v2543_v38 = vadd.f32 %v1166_v10, %v1069_v24 }
 0x142   : > { %v2551_v61 = vpop.permute.xlu0 %907  ;;  %v2564_v24 = vadd.f32 %v1169_v29, %v1072_v15  ;;  %v944_v29 = vmul.f32 %v928_v19, %v928_v19 }
 0x143   : > { %v1086_v27 = vpop.permute.xlu1 %1085  ;;  %1867 = vrsqrt.f32 %v2543_v38  ;;  %vm1216_vm1 = vcmp.eq.f32.partialorder %v2543_v38, inf  ;;  %vm1218_vm7 = vcmp.eq.f32.partialorder %v2543_v38, 0.0 }
 0x144   : > { %v1149_v33 = vsub.f32 %v1086_v27, %v2530_v14  ;;  %1869 = vrsqrt.f32 %v2564_v24  ;;  %vm1252_vm0 = vcmp.eq.f32.partialorder %v2564_v24, inf  ;;  %vm1254_vm2 = vcmp.eq.f32.partialorder %v2564_v24, 0.0 }
 0x145   : > { %v1106_v62 = vpop.permute.xlu2 %1105 }
 0x146   : > { %v1165_v30 = vmul.f32 %v1149_v33, %v1149_v33  ;;  %v1154_v35 = vsub.f32 %v1106_v62, %v2530_v14  ;;  %v929_v62 = vsub.f32 %v884_v11, %v2479_v12 }
 0x148   : > { %v2546_v49 = vadd.f32 %v1165_v30, %v1068_v20 }
 0x14a   : > { %v1098_v8 = vpop.permute.xlu0 %1097  ;;  %1871 = vrsqrt.f32 %v2546_v49  ;;  %vm1204_vm3 = vcmp.eq.f32.partialorder %v2546_v49, inf  ;;  %vm1206_vm4 = vcmp.eq.f32.partialorder %v2546_v49, 0.0 }
 0x14b   : > { %v1094_v37 = vpop.permute.xlu1 %1093  ;;  %v1152_v10 = vsub.f32 %v1098_v8, %v2530_v14 }
 0x14c   : > { %v1151_v21 = vsub.f32 %v1094_v37, %v2530_v14  ;;  %v947_v37 = vmul.f32 %v931_v47, %v931_v47 }
 0x14d   : > { %v1168_v22 = vmul.f32 %v1152_v10, %v1152_v10 }
 0x14e   : > { %v1167_v53 = vmul.f32 %v1151_v21, %v1151_v21  ;;  %v1005_v46 = vpop.permute.xlu2 %1004  ;;  %v932_v21 = vsub.f32 %v896_v55, %v2479_v12  ;;  %v930_v55 = vsub.f32 %v2506_v5, %v2479_v12 }
 0x14f   : > { %v1044_v13 = vsub.f32 %v1005_v46, %v2499_v32 }
 0x150   : > { %v2549_v58 = vadd.f32 %v1167_v53, %v1070_v60  ;;  %v1039_v60 = vsub.f32 %v2501_v7, %v2499_v32 }
 0x151   : > { %v1060_v7 = vmul.f32 %v1044_v13, %v1044_v13  ;;  %v1170_v13 = vmul.f32 %v1154_v35, %v1154_v35 }
 0x152   : > { %v1055_v52 = vmul.f32 %v1039_v60, %v1039_v60  ;;  %v1118_v16 = vpop.permute.xlu0 %1117  ;;  %v2583_v60 = vpop.eup %1867  ;;  %vm1228_vm8 = vcmp.eq.f32.partialorder %v2549_v58, inf  ;;  %vm1230_vm9 = vcmp.eq.f32.partialorder %v2549_v58, 0.0 }
 0x153   : > { %v1157_v27 = vsub.f32 %v1118_v16, %v2530_v14  ;;  %v1076_v53 = vadd.f32 %v1060_v7, %v947_v37  ;;  %v1210_v25 = vmul.f32 %v2583_v60, %v2543_v38 }
 0x154   : > { %v993_v59 = vpop.permute.xlu1 %992  ;;  %v1071_v0 = vadd.f32 %v1055_v52, %v942_v6  ;;  %v948_v6 = vmul.f32 %v932_v21, %v932_v21 }
 0x155   : > { %v1041_v15 = vsub.f32 %v993_v59, %v2499_v32  ;;  %v1173_v46 = vmul.f32 %v1157_v27, %v1157_v27  ;;  %v2586_v59 = vpop.eup %1869  ;;  %v1059_v27 = vmul.f32 %v1043_v28, %v1043_v28 }
 0x156   : > { %v1009_v2 = vpop.permute.xlu2 %1008  ;;  %v2573_v20 = vadd.f32 %v1168_v22, %v1071_v0  ;;  %v2592_v10 = vpop.eup %1871  ;;  %v1246_v5 = vmul.f32 %v2586_v59, %v2564_v24 }
 0x157   : > { %v1057_v8 = vmul.f32 %v1041_v15, %v1041_v15  ;;  %v1045_v42 = vsub.f32 %v1009_v2, %v2499_v32  ;;  %v2595_v52 = vadd.f32 %v1173_v46, %v1076_v53  ;;  %v1198_v15 = vmul.f32 %v2592_v10, %v2546_v49 }
 0x158   : > { %1873 = vrsqrt.f32 %v2573_v20  ;;  %v946_v53 = vmul.f32 %v930_v55, %v930_v55  ;;  %vm1240_vm5 = vcmp.eq.f32.partialorder %v2573_v20, inf  ;;  %vm1242_vm13 = vcmp.eq.f32.partialorder %v2573_v20, 0.0 }
 0x159   : > { %1875 = vrsqrt.f32 %v2549_v58  ;;  %v1073_v22 = vadd.f32 %v1057_v8, %v944_v29  ;;  %v1061_v16 = vmul.f32 %v1045_v42, %v1045_v42  ;;  %v1247_v42 = vmul.f32 %v2586_v59, %v1246_v5 }
 0x15a   : > { %1877 = vrsqrt.f32 %v2595_v52  ;;  %v1199_v28 = vmul.f32 %v2592_v10, %v1198_v15  ;;  %v933_v5 = vsub.f32 %v2526_v56, %v2479_v12  ;;  %vm1300_vm11 = vcmp.eq.f32.partialorder %v2595_v52, inf }
 0x15b   : > { %v2615_v46 = vadd.f32 %v1170_v13, %v1073_v22  ;;  %v1077_v35 = vadd.f32 %v1061_v16, %v948_v6  ;;  %v1075_v13 = vadd.f32 %v1059_v27, %v946_v53  ;;  %v1248_v15 = vmul.f32 0.5, %v1247_v42 }
 0x15c   : > { %v997_v34 = vpop.permute.xlu1 %996  ;;  %v1200_v27 = vmul.f32 0.5, %v1199_v28  ;;  %v949_v28 = vmul.f32 %v933_v5, %v933_v5 }
 0x15d   : > { %v1042_v2 = vsub.f32 %v997_v34, %v2499_v32  ;;  %v934_v34 = vsub.f32 %v2476_v40, %v2479_v12  ;;  %v1211_v40 = vmul.f32 %v2583_v60, %v1210_v25  ;;  %1879 = vrsqrt.f32 %v2615_v46 }
 0x15e   : > { %v2605_v11 = vpop.eup %1873  ;;  %v935_v25 = vsub.f32 %v2551_v61, %v2479_v12  ;;  %v1201_v43 = vsub.f32 1.5, %v1200_v27 }
 0x15f   : > { %v1122_v31 = vpop.permute.xlu2 %1121  ;;  %v2611_v37 = vpop.eup %1875  ;;  %v1058_v19 = vmul.f32 %v1042_v2, %v1042_v2  ;;  %v950_v29 = vmul.f32 %v934_v34, %v934_v34  ;;  %v1234_v2 = vmul.f32 %v2605_v11, %v2573_v20 }
 0x160   : > { %v1158_v47 = vsub.f32 %v1122_v31, %v2530_v14  ;;  %v945_v31 = vmul.f32 %v929_v62, %v929_v62  ;;  %v1222_v62 = vmul.f32 %v2611_v37, %v2549_v58 }
 0x162   : > { %v1174_v8 = vmul.f32 %v1158_v47, %v1158_v47  ;;  %v1074_v18 = vadd.f32 %v1058_v19, %v945_v31  ;;  %v2631_v47 = vpop.eup %1877  ;;  %v1223_v31 = vmul.f32 %v2611_v37, %v1222_v62  ;;  %v1235_v19 = vmul.f32 %v2605_v11, %v1234_v2 }
 0x163   : > { %v1249_v62 = vsub.f32 1.5, %v1248_v15 }
 0x164   : > { %v2628_v22 = vadd.f32 %v1174_v8, %v1077_v35  ;;  %v1134_v35 = vpop.permute.xlu0 %1133 }
 0x165   : > { %v1110_v57 = vpop.permute.xlu1 %1109 }
 0x166   : > { %v1155_v21 = vsub.f32 %v1110_v57, %v2530_v14  ;;  %1881 = vrsqrt.f32 %v2628_v22 }
 0x167   : > { %v2554_v63 = vpop.permute.xlu2 %1125 }
 0x168   : > { %v1171_v57 = vmul.f32 %v1155_v21, %v1155_v21  ;;  %v1159_v53 = vsub.f32 %v2554_v63, %v2530_v14 }
 0x16a   : > { %v2640_v21 = vadd.f32 %v1171_v57, %v1074_v18  ;;  %v951_v18 = vmul.f32 %v935_v25, %v935_v25  ;;  %v2651_v57 = vpop.eup %1879  ;;  %v1219_v25 = vand.u32 2147483648, %v2543_v38 }
 0x16b   : > { %v1258_v15 = vmul.f32 %v2651_v57, %v2615_v46 }
 0x16c   : > { %1883 = vrsqrt.f32 %v2640_v21 }
 0x16d   : > { %v2560_v41 = vpop.permute.xlu1 %1113 }
 0x16e   : > { %v1156_v55 = vsub.f32 %v2560_v41, %v2530_v14  ;;  %v1212_v41 = vmul.f32 0.5, %v1211_v40  ;;  %v1294_v40 = vmul.f32 %v2631_v47, %v2595_v52 }
 0x16f   : > { %v2570_v33 = vpop.permute.xlu2 %1129 }
 0x170   : > { %v1160_v61 = vsub.f32 %v2570_v33, %v2530_v14  ;;  %v1213_v2 = vsub.f32 1.5, %v1212_v41  ;;  %v1175_v33 = vmul.f32 %v1159_v53, %v1159_v53  ;;  %v1295_v5 = vmul.f32 %v2631_v47, %v1294_v40  ;;  %v2662_v41 = vpop.eup %1881 }
 0x171   : > { %v1259_v40 = vmul.f32 %v2651_v57, %v1258_v15  ;;  %v1033_v15 = vpop.permute.xlu0 %1032 }
 0x172   : > { %v1176_v39 = vmul.f32 %v1160_v61, %v1160_v61  ;;  %v1296_v61 = vmul.f32 0.5, %v1295_v5  ;;  %v1231_v5 = vand.u32 2147483648, %v2549_v58 }
 0x176   : > { %v1013_v30 = vpop.permute.xlu1 %1012 }
 0x177   : > { %v1046_v6 = vsub.f32 %v1013_v30, %v2499_v32 }
 0x178   : > { %v2599_v7 = vpop.permute.xlu2 %1024 }
 0x179   : > { %v1062_v56 = vmul.f32 %v1046_v6, %v1046_v6  ;;  %v1224_v6 = vmul.f32 0.5, %v1223_v31 }
 0x17b   : > { %v1225_v27 = vsub.f32 1.5, %v1224_v6 }
 0x17f   : > { %v1017_v0 = vpop.permute.xlu1 %1016 }
 0x180   : > { %v1047_v16 = vsub.f32 %v1017_v0, %v2499_v32  ;;  %v1172_v0 = vmul.f32 %v1156_v55, %v1156_v55  ;;  %v2644_v8 = vpop.permute.xlu2 %1028  ;;  %v1161_v55 = vsub.f32 %v1134_v35, %v2530_v14  ;;  %v1202_v35 = vmul.f32 %v2592_v10, %v1201_v43 }
 0x181   : > { %v1207_v43 = vand.u32 2147483648, %v2546_v49 }
 0x182   : > { %v1063_v42 = vmul.f32 %v1047_v16, %v1047_v16  ;;  %v2655_v17 = vadd.f32 %v1172_v0, %v1075_v13  ;;  %v1078_v16 = vadd.f32 %v1062_v56, %v949_v28  ;;  %v1177_v31 = vmul.f32 %v1161_v55, %v1161_v55 }
 0x183   : > { %v1214_v0 = vmul.f32 %v2583_v60, %v1213_v2  ;;  %v1255_v60 = vand.u32 2147483648, %v2564_v24  ;;  %v1203_v2 = vmul.f32 %v1202_v35, %v2546_v49 }
 0x184   : > { %v1079_v1 = vadd.f32 %v1063_v42, %v950_v29  ;;  %1885 = vrsqrt.f32 %v2655_v17  ;;  %v2668_v29 = vadd.f32 %v1175_v33, %v1078_v16  ;;  %v2674_v42 = vpop.eup %1883  ;;  %v1243_v16 = vand.u32 2147483648, %v2573_v20 }
 0x185   : > { %v1215_v28 = vmul.f32 %v1214_v0, %v2543_v38  ;;  %v1270_v55 = vmul.f32 %v2674_v42, %v2640_v21 }
 0x186   : > { %v2670_v56 = vadd.f32 %v1176_v39, %v1079_v1  ;;  %v1306_v39 = vmul.f32 %v2662_v41, %v2628_v22  ;;  %1887 = vrsqrt.f32 %v2668_v29 }
 0x187   : > { %v1021_v34 = vpop.permute.xlu1 %1020  ;;  %v1271_v35 = vmul.f32 %v2674_v42, %v1270_v55 }
 0x188   : > { %v1048_v30 = vsub.f32 %v1021_v34, %v2499_v32  ;;  %v1236_v34 = vmul.f32 0.5, %v1235_v19  ;;  %v1250_v19 = vmul.f32 %v2586_v59, %v1249_v62  ;;  %1889 = vrsqrt.f32 %v2670_v56 }
 0x189   : > { %v920_v59 = vpop.permute.xlu2 %919  ;;  %v1307_v33 = vmul.f32 %v2662_v41, %v1306_v39  ;;  %v1049_v39 = vsub.f32 %v2599_v7, %v2499_v32 }
 0x18a   : > { %v1064_v63 = vmul.f32 %v1048_v30, %v1048_v30  ;;  %v1237_v53 = vsub.f32 1.5, %v1236_v34  ;;  %v1251_v10 = vmul.f32 %v1250_v19, %v2564_v24  ;;  %v2696_v6 = vpop.eup %1885  ;;  %v1260_v34 = vmul.f32 0.5, %v1259_v40 }
 0x18c   : > { %v1080_v30 = vadd.f32 %v1064_v63, %v951_v18  ;;  %v1226_v18 = vmul.f32 %v2611_v37, %v1225_v27  ;;  %v1238_v62 = vmul.f32 %v2605_v11, %v1237_v53  ;;  %v1297_v63 = vsub.f32 1.5, %v1296_v61  ;;  %v2724_v40 = vpop.eup %1887 }
 0x18d   : > { %v1253_v37 = vsel %vm1252_vm0, %v2564_v24, %v1251_v10  ;;  %v1205_v27 = vsel %vm1204_vm3, %v2546_v49, %v1203_v2  ;;  %v1282_v61 = vmul.f32 %v2696_v6, %v2655_v17  ;;  %v938_v2 = vsub.f32 %v920_v59, %v2479_v12 }
 0x18e   : > { %v2682_v1 = vadd.f32 %v1177_v31, %v1080_v30  ;;  %v1217_v31 = vsel %vm1216_vm1, %v2543_v38, %v1215_v28  ;;  %v1227_v19 = vmul.f32 %v1226_v18, %v2549_v58  ;;  %v1239_v0 = vmul.f32 %v1238_v62, %v2573_v20  ;;  %v2732_v62 = vpop.eup %1889  ;;  %v2768_v30 = vld [vmem:[#allocation2] ss:$0 sm:$0xff] }
 0x18f   : > { %v1298_v53 = vmul.f32 %v2631_v47, %v1297_v63  ;;  %v2730_v10 = vsel %vm1254_vm2, %v1255_v60, %v1253_v37  ;;  %v1261_v28 = vsub.f32 1.5, %v1260_v34  ;;  %v1308_v18 = vmul.f32 0.5, %v1307_v33 }
 0x190   : > { %v912_v13 = vpop.permute.xlu1 %911  ;;  %1891 = vrsqrt.f32 %v2682_v1  ;;  %v1051_v63 = vsub.f32 %v1033_v15, %v2499_v32  ;;  %v2741_v55 = vsel %vm1218_vm7, %v1219_v25, %v1217_v31  ;;  %v2745_v24 = vsel %vm1206_vm4, %v1207_v43, %v1205_v27 }
 0x191   : > { %v936_v47 = vsub.f32 %v912_v13, %v2479_v12  ;;  %vm1302_vm0 = vcmp.eq.f32.partialorder %v2595_v52, 0.0  ;;  %v1229_v13 = vsel %vm1228_vm8, %v2549_v58, %v1227_v19  ;;  %v1241_v59 = vsel %vm1240_vm5, %v2573_v20, %v1239_v0 }
 0x192   : > { %v1146_v7 = vpop.permute.xlu2 %1145  ;;  %v1299_v25 = vmul.f32 %v1298_v53, %v2595_v52  ;;  %vm1264_vm1 = vcmp.eq.f32.partialorder %v2615_v46, inf  ;;  %v1272_v49 = vmul.f32 0.5, %v1271_v35  ;;  %v1318_v43 = vmul.f32 %v2724_v40, %v2668_v29 }
 0x193   : > { %v1283_v34 = vmul.f32 %v2696_v6, %v1282_v61  ;;  %v1065_v33 = vmul.f32 %v1049_v39, %v1049_v39  ;;  %v1262_v31 = vmul.f32 %v2651_v57, %v1261_v28  ;;  %v1309_v19 = vsub.f32 1.5, %v1308_v18 }
 0x194   : > { %v1330_v0 = vmul.f32 %v2732_v62, %v2670_v56  ;;  %v952_v27 = vmul.f32 %v936_v47, %v936_v47  ;;  %v954_v53 = vmul.f32 %v938_v2, %v938_v2  ;;  %v1067_v60 = vmul.f32 %v1051_v63, %v1051_v63 }
 0x195   : > { %v1164_v35 = vsub.f32 %v1146_v7, %v2530_v14  ;;  %v1315_v39 = vand.u32 2147483648, %v2628_v22  ;;  %v2775_v57 = vsel %vm1230_vm9, %v1231_v5, %v1229_v13  ;;  %v2779_v28 = vsel %vm1242_vm13, %v1243_v16, %v1241_v59 }
 0x196   : > { %v2755_v38 = vpop.eup %1891  ;;  %v1301_v18 = vsel %vm1300_vm11, %v2595_v52, %v1299_v25  ;;  %vm1266_vm2 = vcmp.eq.f32.partialorder %v2615_v46, 0.0  ;;  %v1273_v47 = vsub.f32 1.5, %v1272_v49  ;;  %v1319_v2 = vmul.f32 %v2724_v40, %v1318_v43 }
 0x197   : > { %v1342_v61 = vmul.f32 %v2755_v38, %v2682_v1  ;;  %v1284_v63 = vmul.f32 0.5, %v1283_v34  ;;  %v1263_v58 = vmul.f32 %v1262_v31, %v2615_v46  ;;  %v1310_v5 = vmul.f32 %v2662_v41, %v1309_v19 }
 0x198   : > { %v2702_v11 = vpop.permute.xlu1 %915  ;;  %vm1312_vm3 = vcmp.eq.f32.partialorder %v2628_v22, inf  ;;  %v1331_v20 = vmul.f32 %v2732_v62, %v1330_v0  ;;  %v1050_v16 = vsub.f32 %v2644_v8, %v2499_v32  ;;  %v1081_v13 = vadd.f32 %v1065_v33, %v952_v27 }
 0x199   : > { %v1083_v59 = vadd.f32 %v1067_v60, %v954_v53  ;;  %v1180_v25 = vmul.f32 %v1164_v35, %v1164_v35  ;;  %v937_v49 = vsub.f32 %v2702_v11, %v2479_v12  ;;  %v1343_v34 = vmul.f32 %v2755_v38, %v1342_v61 }
 0x19a   : > { %v3303_v41 = vand.u32 2147483648, %v2595_v52  ;;  %vm1314_vm4 = vcmp.eq.f32.partialorder %v2628_v22, 0.0  ;;  %v1274_v8 = vmul.f32 %v2674_v42, %v1273_v47  ;;  %v1320_v12 = vmul.f32 0.5, %v1319_v2 }
 0x19b   : > { %v1285_v11 = vsub.f32 1.5, %v1284_v63  ;;  %vm1276_vm5 = vcmp.eq.f32.partialorder %v2640_v21, inf  ;;  %v1279_v52 = vand.u32 2147483648, %v2640_v21  ;;  %v1332_v0 = vmul.f32 0.5, %v1331_v20 }
 0x19c   : > { %v2803_v19 = vsel %vm1302_vm0, %v3303_v41, %v1301_v18  ;;  %v1066_v27 = vmul.f32 %v1050_v16, %v1050_v16  ;;  %v1311_v42 = vmul.f32 %v1310_v5, %v2628_v22  ;;  %v953_v61 = vmul.f32 %v937_v49, %v937_v49 }
 0x19d   : > { %v2820_v18 = vadd.f32 %v1180_v25, %v1083_v59  ;;  %v1344_v47 = vmul.f32 0.5, %v1343_v34  ;;  %vm1278_vm8 = vcmp.eq.f32.partialorder %v2640_v21, 0.0  ;;  %v1275_v63 = vmul.f32 %v1274_v8, %v2640_v21 }
 0x19e   : > { %v3304_v20 = vand.u32 2147483648, %v2615_v46  ;;  %v1082_v25 = vadd.f32 %v1066_v27, %v953_v61 }
 0x19f   : > { %v798_v37 = vpop.f32.mrf.mxu0  ;;  %v2762_v15 = vpop.f32.mrf.mxu1  ;;  %v1277_v36 = vsel %vm1276_vm5, %v2640_v21, %v1275_v63  ;;  %vm1336_vm5 = vcmp.eq.f32.partialorder %v2670_v56, inf }
 0x1a0   : > { %v842_v43 = vadd.f32 %v2768_v30, %v798_v37  ;;  %v1265_v37 = vsel %vm1264_vm1, %v2615_v46, %v1263_v58  ;;  %v1286_v58 = vmul.f32 %v2696_v6, %v1285_v11  ;;  %vm1288_vm1 = vcmp.eq.f32.partialorder %v2655_v17, inf }
 0x1a1   : > { %v1138_v44 = vpop.permute.xlu1 %1137  ;;  %v2829_v5 = vsel %vm1266_vm2, %v3304_v20, %v1265_v37  ;;  %v1291_v6 = vand.u32 2147483648, %v2655_v17  ;;  %v1345_v46 = vsub.f32 1.5, %v1344_v47  ;;  %v846_v63 = vadd.f32 %v2768_v30, %v2762_v15 }
 0x1a2   : > { %v1162_v7 = vsub.f32 %v1138_v44, %v2530_v14  ;;  %vm1389_vm7 = vcmp.lt.f32.partialorder %v842_v43, 8.0  ;;  %vm1437_vm9 = vcmp.eq.f32.partialorder %v842_v43, 0.0  ;;  %v1313_v43 = vsel %vm1312_vm3, %v2628_v22, %v1311_v42 }
 0x1a3   : > { %vm2834_vm13 = vmand %vm613_vm14, %vm1389_vm7  ;;  %vm1290_vm7 = vcmp.eq.f32.partialorder %v2655_v17, 0.0  ;;  %v1287_v8 = vmul.f32 %v1286_v58, %v2655_v17  ;;  %v2886_v54 = vsel %vm1314_vm4, %v1315_v39, %v1313_v43  ;;  %v1327_v39 = vand.u32 2147483648, %v2668_v29 }
 0x1a4   : > { %v1178_v44 = vmul.f32 %v1162_v7, %v1162_v7  ;;  %v1321_v7 = vsub.f32 1.5, %v1320_v12  ;;  %vm2845_vm2 = vmand %vm613_vm14, %vm1437_vm9  ;;  %v1421_v12 = vsel %vm2834_vm13, %v2745_v24, 0.0  ;;  %v1339_v58 = vand.u32 2147483648, %v2670_v56 }
 0x1a5   : > { %v1289_v22 = vsel %vm1288_vm1, %v2655_v17, %v1287_v8  ;;  %vm1348_vm9 = vcmp.eq.f32.partialorder %v2682_v1, inf  ;;  %vm1393_vm13 = vcmp.lt.f32.partialorder %v846_v63, 8.0 }
 0x1a6   : > { %v2797_v31 = vpop.f32.mrf.mxu2  ;;  %v2805_v32 = vpop.f32.mrf.mxu3  ;;  %v2816_v53 = vadd.f32 %v1178_v44, %v1081_v13  ;;  %v1333_v13 = vsub.f32 1.5, %v1332_v0  ;;  %v1322_v41 = vmul.f32 %v2724_v40, %v1321_v7  ;;  %v1469_v40 = vsel %vm2845_vm2, %v2745_v24, 0.0 }
 0x1a7   : > { %v800_v60 = vpop.f32.mrf.mxu0  ;;  %v2809_v33 = vpop.f32.mrf.mxu1 }
 0x1a8   : > { %v843_v35 = vadd.f32 %v2768_v30, %v800_v60  ;;  %1893 = vrsqrt.f32 %v2816_v53  ;;  %v1334_v0 = vmul.f32 %v2732_v62, %v1333_v13  ;;  %v1323_v24 = vmul.f32 %v1322_v41, %v2668_v29 }
 0x1a9   : > { %v1142_v2 = vpop.permute.xlu1 %1141  ;;  %1895 = vrsqrt.f32 %v2820_v18  ;;  %v847_v17 = vadd.f32 %v2768_v30, %v2809_v33 }
 0x1aa   : > { %vm1390_vm11 = vcmp.lt.f32.partialorder %v843_v35, 8.0  ;;  %v1163_v16 = vsub.f32 %v1142_v2, %v2530_v14  ;;  %vm1438_vm0 = vcmp.eq.f32.partialorder %v843_v35, 0.0  ;;  %v1346_v35 = vmul.f32 %v2755_v38, %v1345_v46 }
 0x1ab   : > { %vm1406_vm6 = vmand %vm614_vm15, %vm1390_vm11  ;;  %v1335_v21 = vmul.f32 %v1334_v0, %v2670_v56 }
 0x1ac   : > { %v1179_v49 = vmul.f32 %v1163_v16, %v1163_v16  ;;  %v1422_v11 = vsel %vm1406_vm6, %v2741_v55, 0.0  ;;  %vm1454_vm14 = vmand %vm614_vm15, %vm1438_vm0  ;;  %vm1324_vm6 = vcmp.eq.f32.partialorder %v2668_v29, inf  ;;  %vm1326_vm15 = vcmp.eq.f32.partialorder %v2668_v29, 0.0 }
 0x1ad   : > { %v1470_v27 = vsel %vm1454_vm14, %v2741_v55, 0.0  ;;  %v1486_v42 = vadd.f32 %v1422_v11, %v1421_v12  ;;  %v2892_v55 = vsel %vm1278_vm8, %v1279_v52, %v1277_v36  ;;  %vm1338_vm8 = vcmp.eq.f32.partialorder %v2670_v56, 0.0 }
 0x1ae   : > { %v2853_v44 = vpop.f32.mrf.mxu2  ;;  %v2858_v34 = vpop.f32.mrf.mxu3  ;;  %v2872_v60 = vadd.f32 %v1179_v49, %v1082_v25  ;;  %v1510_v2 = vadd.f32 %v1470_v27, %v1469_v40  ;;  %v850_v52 = vadd.f32 %v2768_v30, %v2797_v31  ;;  %v1347_v7 = vmul.f32 %v1346_v35, %v2682_v1 }
 0x1af   : > { %v803_v37 = vpop.f32.mrf.mxu0  ;;  %v813_v47 = vpop.f32.mrf.mxu1  ;;  %v1325_v20 = vsel %vm1324_vm6, %v2668_v29, %v1323_v24  ;;  %v2924_v31 = vsel %vm1290_vm7, %v1291_v6, %v1289_v22  ;;  %vm1441_vm0 = vcmp.eq.f32.partialorder %v846_v63, 0.0  ;;  %v1337_v14 = vsel %vm1336_vm5, %v2670_v56, %v1335_v21 }
 0x1b0   : > { %v844_v61 = vadd.f32 %v2768_v30, %v803_v37  ;;  %1897 = vrsqrt.f32 %v2872_v60  ;;  %v2888_v62 = vpop.eup %1893  ;;  %vm1397_vm2 = vcmp.lt.f32.partialorder %v850_v52, 8.0  ;;  %v1349_v48 = vsel %vm1348_vm9, %v2682_v1, %v1347_v7  ;;  %vm2959_vm6 = vmand %vm617_vm10, %vm1441_vm0 }
 0x1b1   : > { %v2897_v38 = vpop.eup %1895  ;;  %v1354_v15 = vmul.f32 %v2888_v62, %v2816_v53  ;;  %vm1445_vm7 = vcmp.eq.f32.partialorder %v850_v52, 0.0  ;;  %vm1350_vm14 = vcmp.eq.f32.partialorder %v2682_v1, 0.0  ;;  %v848_v0 = vadd.f32 %v2768_v30, %v813_v47 }
 0x1b2   : > { %vm1391_vm3 = vcmp.lt.f32.partialorder %v844_v61, 8.0  ;;  %vm1439_vm4 = vcmp.eq.f32.partialorder %v844_v61, 0.0  ;;  %v1378_v13 = vmul.f32 %v2897_v38, %v2820_v18  ;;  %v2966_v40 = vsel %vm1326_vm15, %v1327_v39, %v1325_v20 }
 0x1b3   : > { %vm1407_vm11 = vmand %vm615_vm12, %vm1391_vm3  ;;  %v1355_v41 = vmul.f32 %v2888_v62, %v1354_v15  ;;  %vm3313_vm3 = vcmp.lt.f32.partialorder %v2358_v45, 0.25  ;;  %v2981_v61 = vsel %vm1338_vm8, %v1339_v58, %v1337_v14  ;;  %v1387_v29 = vand.u32 2147483648, %v2820_v18 }
 0x1b4   : > { %v1423_v25 = vsel %vm1407_vm11, %v2775_v57, 0.0  ;;  %vm1455_vm1 = vmand %vm615_vm12, %vm1439_vm4  ;;  %v1379_v11 = vmul.f32 %v2897_v38, %v1378_v13  ;;  %v2997_v24 = vadd.f32 %v2768_v30, %v2805_v32  ;;  %vm1442_vm8 = vcmp.eq.f32.partialorder %v847_v17, 0.0 }
 0x1b5   : > { %v1471_v6 = vsel %vm1455_vm1, %v2775_v57, 0.0  ;;  %v1487_v46 = vadd.f32 %v1486_v42, %v1423_v25  ;;  %vm2949_vm12 = vmand %vm617_vm10, %vm1393_vm13  ;;  %v1351_v57 = vand.u32 2147483648, %v2682_v1  ;;  %vm1394_vm10 = vcmp.lt.f32.partialorder %v847_v17, 8.0 }
 0x1b6   : > { %v2920_v16 = vpop.f32.mrf.mxu3  ;;  %v2928_v59 = vpop.eup %1897  ;;  %v1511_v8 = vadd.f32 %v1510_v2, %v1471_v6  ;;  %vm2973_vm4 = vmand %vm3313_vm3, %vm1397_vm2  ;;  %v1356_v35 = vmul.f32 0.5, %v1355_v41  ;;  %v1425_v56 = vsel %vm2949_vm12, %v2730_v10, 0.0  ;;  %vm3319_vm13 = vcmp.lt.f32.partialorder %v2425_v4, 0.25 }
 0x1b7   : > { %v823_v49 = vpop.f32.mrf.mxu2  ;;  %v1366_v43 = vmul.f32 %v2928_v59, %v2872_v60  ;;  %v805_v36 = vpop.f32.mrf.mxu0  ;;  %v2977_v26 = vsel %vm1350_vm14, %v1351_v57, %v1349_v48  ;;  %vm3316_vm15 = vmmov %vm3313_vm3  ;;  %v1380_v63 = vmul.f32 0.5, %v1379_v11  ;;  %vm1395_vm1 = vcmp.lt.f32.partialorder %v848_v0, 8.0 }
 0x1b8   : > { %v815_v12 = vpop.f32.mrf.mxu1  ;;  %v845_v1 = vadd.f32 %v2768_v30, %v805_v36  ;;  %vm2987_vm5 = vmand %vm3316_vm15, %vm1445_vm7  ;;  %vm3321_vm12 = vcmp.lt.f32.partialorder %v2444_v3, 0.25  ;;  %v851_v52 = vadd.f32 %v2768_v30, %v2853_v44  ;;  %vm1443_vm3 = vcmp.eq.f32.partialorder %v848_v0, 0.0 }
 0x1b9   : > { %v1367_v27 = vmul.f32 %v2928_v59, %v1366_v43  ;;  %v849_v2 = vadd.f32 %v2768_v30, %v815_v12  ;;  %vm3320_vm2 = vmmov %vm3319_vm13  ;;  %v1473_v4 = vsel %vm2959_vm6, %v2730_v10, 0.0  ;;  %v1357_v58 = vsub.f32 1.5, %v1356_v35  ;;  %v1533_v12 = vld [vmem:[#allocation2] sm:$0x1] }
 0x1ba   : > { %vm1392_vm9 = vcmp.lt.f32.partialorder %v845_v1, 8.0  ;;  %vm1440_vm11 = vcmp.eq.f32.partialorder %v845_v1, 0.0  ;;  %vm3011_vm14 = vmand %vm3321_vm12, %vm1394_vm10  ;;  %v1381_v13 = vsub.f32 1.5, %v1380_v63  ;;  %v852_v17 = vadd.f32 %v2768_v30, %v823_v49 }
 0x1bb   : > { %vm1408_vm0 = vmand %vm3319_vm13, %vm1392_vm9  ;;  %v1368_v22 = vmul.f32 0.5, %v1367_v27  ;;  %vm1396_vm10 = vcmp.lt.f32.partialorder %v849_v2, 8.0  ;;  %vm1444_vm6 = vcmp.eq.f32.partialorder %v849_v2, 0.0  ;;  %v1426_v25 = vsel %vm3011_vm14, %v2829_v5, 0.0 }
 0x1bc   : > { %v1424_v21 = vsel %vm1408_vm0, %v2779_v28, 0.0  ;;  %vm1456_vm7 = vmand %vm3320_vm2, %vm1440_vm11  ;;  %vm3327_vm11 = vcmp.lt.f32.partialorder %v2420_v23, 0.25  ;;  %v1477_v43 = vsel %vm2987_vm5, %v2803_v19, 0.0  ;;  %vm1398_vm2 = vcmp.lt.f32.partialorder %v851_v52, 8.0 }
 0x1bd   : > { %v1472_v7 = vsel %vm1456_vm7, %v2779_v28, 0.0  ;;  %v1488_v15 = vadd.f32 %v1487_v46, %v1424_v21  ;;  %vm3324_vm15 = vmmov %vm3321_vm12  ;;  %v1429_v28 = vsel %vm2973_vm4, %v2803_v19, 0.0  ;;  %v1369_v6 = vsub.f32 1.5, %v1368_v22 }
 0x1be   : > { %v3001_v45 = vpop.f32.mrf.mxu3  ;;  %vm3024_vm9 = vmand %vm3324_vm15, %vm1442_vm8  ;;  %v1512_v20 = vadd.f32 %v1511_v8, %v1472_v7  ;;  %vm1401_vm8 = vcmp.lt.f32.partialorder %v2997_v24, 8.0  ;;  %vm1360_vm7 = vcmp.eq.f32.partialorder %v2816_v53, inf  ;;  %vm3333_vm12 = vcmp.lt.f32.partialorder %v2381_v51, 0.25  ;;  %v3352_v7 = vld [vmem:[#allocation13_spill] sm:$0xff] }
 0x1bf   : > { %v1535_v39 = vadd.f32 %v2313_v50, %v3001_v45  ;;  %vm3034_vm13 = vmand %vm3327_vm11, %vm1395_vm1  ;;  %v1489_v3 = vadd.f32 %v1488_v15, %v1425_v56  ;;  %v825_v44 = vpop.f32.mrf.mxu2  ;;  %vm1449_vm1 = vcmp.eq.f32.partialorder %v2997_v24, 0.0  ;;  %v1474_v36 = vsel %vm3024_vm9, %v2829_v5, 0.0 }
 0x1c0   : > { %vm3330_vm4 = vmmov %vm3327_vm11  ;;  %v1513_v46 = vadd.f32 %v1512_v20, %v1473_v4  ;;  %v1358_v48 = vmul.f32 %v2888_v62, %v1357_v58  ;;  %v1427_v19 = vsel %vm3034_vm13, %v2892_v55, 0.0  ;;  %v853_v8 = vadd.f32 %v2768_v30, %v825_v44 }
 0x1c1   : > { %1537 = vst [vmem:[#allocation1] sm:$0xff] %v1535_v39  ;;  %vm3045_vm0 = vmand %vm3330_vm4, %vm1443_vm3  ;;  %v1490_v49 = vadd.f32 %v1489_v3, %v1426_v25  ;;  %vm1446_vm15 = vcmp.eq.f32.partialorder %v851_v52, 0.0  ;;  %v1382_v57 = vmul.f32 %v2897_v38, %v1381_v13  ;;  %vm1362_vm9 = vcmp.eq.f32.partialorder %v2816_v53, 0.0 }
 0x1c2   : > { %vm3061_vm14 = vmand %vm3333_vm12, %vm1396_vm10  ;;  %v1514_v41 = vadd.f32 %v1513_v46, %v1474_v36  ;;  %v1475_v33 = vsel %vm3045_vm0, %v2892_v55, 0.0  ;;  %vm1399_vm10 = vcmp.lt.f32.partialorder %v852_v17, 8.0  ;;  %v1370_v51 = vmul.f32 %v2928_v59, %v1369_v6 }
 0x1c3   : > { %vm3336_vm5 = vmmov %vm3333_vm12  ;;  %v1491_v62 = vadd.f32 %v1490_v49, %v1427_v19  ;;  %v1428_v11 = vsel %vm3061_vm14, %v2924_v31, 0.0  ;;  %vm3339_vm11 = vcmp.lt.f32.partialorder %v2356_v9, 0.25  ;;  %v855_v55 = vadd.f32 %v2768_v30, %v2858_v34  ;;  %v3373_v49 = vld [vmem:[#allocation9_spill] sm:$0xff] }
 0x1c4   : > { %vm3072_vm3 = vmand %vm3336_vm5, %vm1444_vm6  ;;  %v1515_v37 = vadd.f32 %v1514_v41, %v1475_v33  ;;  %vm1447_vm6 = vcmp.eq.f32.partialorder %v852_v17, 0.0  ;;  %vm1384_vm4 = vcmp.eq.f32.partialorder %v2820_v18, inf  ;;  %v1359_v42 = vmul.f32 %v1358_v48, %v2816_v53  ;;  %v3366_v17 = vld [vmem:[#allocation10_spill] sm:$0xff] }
 0x1c5   : > { %vm3089_vm13 = vmand %vm3339_vm11, %vm1398_vm2  ;;  %v1476_v38 = vsel %vm3072_vm3, %v2924_v31, 0.0  ;;  %v1492_v59 = vadd.f32 %v1491_v62, %v1428_v11  ;;  %vm1400_vm2 = vcmp.lt.f32.partialorder %v853_v8, 8.0  ;;  %v1363_v35 = vand.u32 2147483648, %v2816_v53  ;;  %v3345_v31 = vld [vmem:[#allocation11_spill] sm:$0xff] }
 0x1c6   : > { %vm3342_vm0 = vmmov %vm3339_vm11  ;;  %v1516_v47 = vadd.f32 %v1515_v37, %v1476_v38  ;;  %vm3346_vm14 = vcmp.lt.f32.partialorder %v3345_v31, 0.25  ;;  %vm1448_vm3 = vcmp.eq.f32.partialorder %v853_v8, 0.0  ;;  %v1383_v9 = vmul.f32 %v1382_v57, %v2820_v18  ;;  %v3378_v8 = vld [vmem:[#allocation8_spill] sm:$0xff] }
 0x1c7   : > { %vm3102_vm12 = vmand %vm3342_vm0, %vm1446_vm15  ;;  %v1493_v56 = vadd.f32 %v1492_v59, %v1429_v28  ;;  %v1430_v63 = vsel %vm3089_vm13, %v2886_v54, 0.0  ;;  %v856_v21 = vadd.f32 %v2768_v30, %v2920_v16  ;;  %v1371_v39 = vmul.f32 %v1370_v51, %v2872_v60  ;;  %v3359_v28 = vld [vmem:[#allocation12_spill] sm:$0xff] }
 0x1c8   : > { %v1539_v27 = vld [vmem:[#allocation1 + $0x7] ss:$9 sm:$0xff]  ;;  %vm3111_vm5 = vmand %vm3346_vm14, %vm1399_vm10  ;;  %v1517_v32 = vadd.f32 %v1516_v47, %v1477_v43  ;;  %v1478_v52 = vsel %vm3102_vm12, %v2886_v54, 0.0  ;;  %vm1402_vm10 = vcmp.lt.f32.partialorder %v855_v55, 8.0  ;;  %vm1450_vm13 = vcmp.eq.f32.partialorder %v855_v55, 0.0 }
 0x1c9   : > { %v1541_v34 = vadd.f32 %v1539_v27, %v1533_v12  ;;  %vm3349_vm15 = vmmov %vm3346_vm14  ;;  %vm3353_vm0 = vcmp.lt.f32.partialorder %v3352_v7, 0.25  ;;  %v1494_v4 = vadd.f32 %v1493_v56, %v1430_v63  ;;  %v1361_v16 = vsel %vm1360_vm7, %v2816_v53, %v1359_v42 }
 0x1ca   : > { %vm3122_vm11 = vmand %vm3349_vm15, %vm1447_vm6  ;;  %v1431_v50 = vsel %vm3111_vm5, %v2966_v40, 0.0  ;;  %v1518_v58 = vadd.f32 %v1517_v32, %v1478_v52  ;;  %v857_v20 = vadd.f32 %v2768_v30, %v3001_v45  ;;  %vm1372_vm5 = vcmp.eq.f32.partialorder %v2872_v60, inf }
 0x1cb   : > { %1542 = vst [vmem:[#allocation2] sm:$0x1] %v1541_v34  ;;  %vm3135_vm6 = vmand %vm3353_vm0, %vm1400_vm2  ;;  %vm3360_vm2 = vcmp.lt.f32.partialorder %v3359_v28, 0.25  ;;  %v1479_v3 = vsel %vm3122_vm11, %v2966_v40, 0.0  ;;  %v1375_v44 = vand.u32 2147483648, %v2872_v60  ;;  %v1495_v13 = vadd.f32 %v1494_v4, %v1431_v50 }
 0x1cc   : > { %vm3356_vm12 = vmmov %vm3353_vm0  ;;  %v1373_v45 = vsel %vm1372_vm5, %v2872_v60, %v1371_v39  ;;  %v1432_v40 = vsel %vm3135_vm6, %v2981_v61, 0.0  ;;  %v1519_v25 = vadd.f32 %v1518_v58, %v1479_v3  ;;  %v1364_v14 = vsel %vm1362_vm9, %v1363_v35, %v1361_v16 }
 0x1cd   : > { %vm3148_vm14 = vmand %vm3356_vm12, %vm1448_vm3  ;;  %vm3367_vm11 = vcmp.lt.f32.partialorder %v3366_v17, 0.25  ;;  %v1496_v46 = vadd.f32 %v1495_v13, %v1432_v40  ;;  %vm1404_vm12 = vcmp.lt.f32.partialorder %v857_v20, 8.0 }
 0x1ce   : > { %vm3158_vm7 = vmand %vm3360_vm2, %vm1401_vm8  ;;  %vm1403_vm8 = vcmp.lt.f32.partialorder %v856_v21, 8.0  ;;  %v1480_v6 = vsel %vm3148_vm14, %v2981_v61, 0.0  ;;  %vm3374_vm14 = vcmp.lt.f32.partialorder %v3373_v49, 0.25 }
 0x1cf   : > { %vm3363_vm3 = vmmov %vm3360_vm2  ;;  %v1433_v43 = vsel %vm3158_vm7, %v2977_v26, 0.0  ;;  %v1520_v36 = vadd.f32 %v1519_v25, %v1480_v6 }
 0x1d0   : > { %vm3171_vm15 = vmand %vm3363_vm3, %vm1449_vm1  ;;  %vm1451_vm1 = vcmp.eq.f32.partialorder %v856_v21, 0.0  ;;  %v1497_v19 = vadd.f32 %v1496_v46, %v1433_v43  ;;  %vm1386_vm3 = vcmp.eq.f32.partialorder %v2820_v18, 0.0 }
 0x1d1   : > { %vm3184_vm0 = vmand %vm3367_vm11, %vm1402_vm10  ;;  %vm1374_vm10 = vcmp.eq.f32.partialorder %v2872_v60, 0.0  ;;  %v1481_v61 = vsel %vm3171_vm15, %v2977_v26, 0.0  ;;  %v1385_v26 = vsel %vm1384_vm4, %v2820_v18, %v1383_v9  ;;  %vm3379_vm15 = vcmp.lt.f32.partialorder %v3378_v8, 0.25  ;;  %v1485_v9 = vld [vmem:[#allocation3] sm:$0x1] }
 0x1d2   : > { %vm3370_vm9 = vmmov %vm3367_vm11  ;;  %v1376_v23 = vsel %vm1374_vm10, %v1375_v44, %v1373_v45  ;;  %v1434_v5 = vsel %vm3184_vm0, %v1364_v14, 0.0  ;;  %v1521_v60 = vadd.f32 %v1520_v36, %v1481_v61  ;;  %v1388_v51 = vsel %vm1386_vm3, %v1387_v29, %v1385_v26  ;;  %v1509_v18 = vld [vmem:[#allocation4] sm:$0x1]  ;;  %v1546_v32 = vld [vmem:[#allocation2] sm:$0x1] }
 0x1d3   : > { %vm3197_vm6 = vmand %vm3370_vm9, %vm1450_vm13  ;;  %vm1452_vm13 = vcmp.eq.f32.partialorder %v857_v20, 0.0  ;;  %v1498_v33 = vadd.f32 %v1497_v19, %v1434_v5  ;;  %v1547_v52 = vmin.f32 %v1546_v32, 8.0  ;;  %vm1553_vm4 = vcmask 1040384  }
 0x1d4   : > { %vm3208_vm2 = vmand %vm3374_vm14, %vm1403_vm8  ;;  %v1482_v41 = vsel %vm3197_vm6, %v1364_v14, 0.0 }
 0x1d5   : > { %vm3377_vm7 = vmmov %vm3374_vm14  ;;  %v1435_v62 = vsel %vm3208_vm2, %v1376_v23, 0.0  ;;  %v1522_v57 = vadd.f32 %v1521_v60, %v1482_v41  ;;  %v1548_v7 = vsub.f32 8.0, %v1547_v52 }
 0x1d6   : > { %vm1467_vm5 = vmand %vm3377_vm7, %vm1451_vm1  ;;  %v1499_v11 = vadd.f32 %v1498_v33, %v1435_v62 }
 0x1d7   : > { %vm1420_vm8 = vmand %vm3379_vm15, %vm1404_vm12  ;;  %v1483_v12 = vsel %vm1467_vm5, %v1376_v23, 0.0 }
 0x1d8   : > { %vm3380_vm11 = vmmov %vm3379_vm15  ;;  %v1436_v37 = vsel %vm1420_vm8, %v1388_v51, 0.0  ;;  %v1523_v0 = vadd.f32 %v1522_v57, %v1483_v12 }
 0x1d9   : > { %vm1468_vm0 = vmand %vm3380_vm11, %vm1452_vm13  ;;  %v1500_v38 = vadd.f32 %v1499_v11, %v1436_v37 }
 0x1da   : > { %v1484_v55 = vsel %vm1468_vm0, %v1388_v51, 0.0 }
 0x1db   : > { %v1524_v59 = vadd.f32 %v1523_v0, %v1484_v55  ;;  %v1501_v27 = vrot.slane %v1500_v38, 4 }
 0x1dd   : > { %v1525_v1 = vrot.slane %v1524_v59, 4  ;;  %v1502_v42 = vadd.f32 %v1501_v27, %v1500_v38 }
 0x1df   : > { %v1526_v47 = vadd.f32 %v1525_v1, %v1524_v59  ;;  %v1503_v34 = vrot.slane %v1502_v42, 2 }
 0x1e1   : > { %v1527_v35 = vrot.slane %v1526_v47, 2  ;;  %v1504_v31 = vadd.f32 %v1503_v34, %v1502_v42 }
 0x1e3   : > { %v1528_v2 = vadd.f32 %v1527_v35, %v1526_v47  ;;  %v1505_v56 = vrot.slane %v1504_v31, 1 }
 0x1e5   : > { %v1529_v63 = vrot.slane %v1528_v2, 1  ;;  %v1506_v22 = vadd.f32 %v1505_v56, %v1504_v31 }
 0x1e7   : > { %v1530_v29 = vadd.f32 %v1529_v63, %v1528_v2  ;;  %v1507_v21 = vadd.f32 %v1506_v22, %v1485_v9 }
 0x1e9   : > { %v1531_v39 = vadd.f32 %v1530_v29, %v1509_v18  ;;  %1508 = vst [vmem:[#allocation3] sm:$0x1] %v1507_v21 }
 0x1eb   : > { %1532 = vst [vmem:[#allocation4] sm:$0x1] %v1531_v39 }
 0x1f0   : > { %v1549_v16 = vld [vmem:[#allocation3] sm:$0x1] }
 0x1f2   : > { %v1550_v15 = vld [vmem:[#allocation4] sm:$0x1] }
 0x1f3   : > { %v1551_v4 = vmul.f32 %v1550_v15, %v1548_v7 }
 0x1f5   : > { %v1552_v50 = vadd.f32 %v1551_v4, %v1549_v16 }
 0x1f7   : > { %v1554_v54 = vsel %vm1553_vm4, %v1552_v50, 0.0 }
 0x1f8   : > { %1555 = vadd.xlane.f32.xlu1 %v1554_v54 }
 0x26b   : > { %v1556_v58 = vpop.xlane.xlu1 %1555 }
 0x26c   : > { %v1557_v20 = vrot.slane %v1556_v58, 4 }
 0x26e   : > { %v1558_v28 = vadd.f32 %v1557_v20, %v1556_v58 }
 0x270   : > { %v1559_v10 = vrot.slane %v1558_v28, 2 }
 0x272   : > { %v1560_v3 = vadd.f32 %v1559_v10, %v1558_v28 }
 0x274   : > { %v1561_v44 = vrot.slane %v1560_v3, 1 }
 0x276   : > { %v1562_v13 = vadd.f32 %v1561_v44, %v1560_v3 }
 0x278   : > { %1770 = vpush %v1562_v13 }
 0x2a9   : > { %s1771_s26 = spop %1770 }
 0x2aa   : > { %v1564_v30 = vstv %s1771_s26 }
 0x2ab   : > { %1566 = vst [vmem:[%s216_s19] sm:$0xff] %v1564_v30 }
 0x2ac   : > { %1926 = shalt.err (!%p1923_p5)
}
 0x2ad   : > { %1772 = dma.vmem_to_hbm [thread:$0]  (%p2046_p4), %s1582_s21, 128, %s1584_s23, %s1568_s27  }
 0x2ae PF: > { %p1778_p6 = scmp.ge.s32.totalorder %s1977_s17, 2  ;;  %s1595_s7 = sand.u32 1, %s1957_s12  }
 0x2af   : > { %s1596_s8 = scalar_lea.sflag [#allocation6], %s1595_s7 }
 0x2b0   : > { %p1775_p7 = pnand %p1778_p6, %p2053_p8 }
 0x2b2   : > { %p1776_p9 = pneg %p1775_p7 }
 0x2b4   : > { %1952 = dma.done.wait (%p1776_p9), %s1596_s8, 128  }
 0x2b5   : > { %1954 = vsyncadd (%p1776_p9), %s1596_s8, 4294967168  ;;  %s16_s17 = sadd.s32 1, %s1977_s17   ;;  %s3381_s12 = smov %s1961_s13 }
 0x2b6   : > { %p13_p10 = scmp.ge.s32.totalorder %s16_s17, 4   ;;  %s3382_s13 = smov %s1965_s14 }
 0x2b7   : > { %s3383_s14 = smov %s2059_s25  ;;  %s3384_s15 = smov %s1973_s16 }
 0x2b8   : > { %s3385_s16 = smov %s3387_s20  ;;  %15 = sbr.rel (!%p13_p10) target bundleno = 4 (0x4), region = 79 }
 0x2bd   :  { %1602 = vsyncpa [#allocation6], 1 }
 0x2be   :  { %1604 = vsyncpa [#allocation6 + $0x1], 1 }

</bundles_post_ra>
